<compile_context>
chip_gen: v5e
topology: v5e:2x2
jax: 0.10.0
libtpu: 0.0.40
codegen_flags: <defaults>
</compile_context>

<pallas_src>
import math

import jax
import jax.numpy as jnp
from jax.experimental import pallas as pl
from jax.experimental.pallas import tpu as pltpu

# ---------------- small synthetic config (original: hidden=768, 12 layers, 12 heads) ----
VOCAB = 32
HIDDEN = 32
N_HEADS = 2
HEAD_DIM = HIDDEN // N_HEADS
FFN = 64
N_LAYERS = 2
MAX_POS = 16
TYPE_VOCAB = 2
LN_EPS = 1e-12
NEG_INF = -10000.0
HEAD_OUT = 8                      # 4 real span-head logits + 4 pad columns
PRM_ROWS = 1 + 4 * N_LAYERS       # packed bias / LayerNorm parameter slab
PRM_COLS = 3 * HIDDEN
VMEM_LIMIT = 16 * 1024 * 1024     # generous for this config; size from working set at real config

# packed-parameter slab layout (f32, (PRM_ROWS, PRM_COLS)):
#   row 0            : [0:H] emb_ln_g | [H:2H] emb_ln_b | [2H:2H+HEAD_OUT] head_b
#   row 1+4l+0       : [0:H] bq       | [H:2H] bk       | [2H:3H] bv
#   row 1+4l+1       : [0:H] bo       | [H:2H] ln1_g    | [2H:3H] ln1_b
#   row 1+4l+2       : [0:FFN] b1     | [FFN:FFN+H] b2
#   row 1+4l+3       : [0:H] ln2_g    | [H:2H] ln2_b


def _layernorm(x, g, b):
    # x: (rows, H) f32 ; g/b: (1, H) f32
    mu = jnp.mean(x, axis=-1, keepdims=True)
    var = jnp.mean(jnp.square(x - mu), axis=-1, keepdims=True)
    return (x - mu) * jax.lax.rsqrt(var + LN_EPS) * g + b


# ---------------- fused forward kernel (one batch element per grid step) ----------------
def _bert_mrc_kernel(x_ref, bias_ref, qkvw_ref, wo_ref, w1_ref, w2_ref, hw_ref, prm_ref,
                     o_ref):
    # x_ref    : (1, S, H)  bf16  summed embeddings for this batch element
    # bias_ref : (1, 1, S)  f32   additive attention-mask bias (layer-invariant)
    # qkvw_ref : (L, 3, H, H) bf16 ; wo_ref: (L, NH, dh, H) bf16
    # w1_ref   : (L, H, FFN) bf16 ; w2_ref: (L, FFN, H) bf16 ; hw_ref: (H, HEAD_OUT) bf16
    # prm_ref  : (PRM_ROWS, PRM_COLS) f32 packed biases / LN params
    # o_ref    : (1, S, HEAD_OUT) f32 sigmoid probabilities
    prm = prm_ref[...]                                   # tiny, resident
    bias = bias_ref[0]                                   # (1, S) f32, broadcast over queries
    scale = 1.0 / math.sqrt(HEAD_DIM)

    # ---- embedding LayerNorm (no residual) ----
    x = _layernorm(x_ref[0].astype(jnp.float32),
                   prm[0:1, 0:HIDDEN], prm[0:1, HIDDEN:2 * HIDDEN])       # (S, H) f32
    S = x.shape[0]

    # ---- encoder layers (static unroll) ----
    for l in range(N_LAYERS):
        base = 1 + 4 * l
        bq = prm[base:base + 1, 0:HIDDEN]
        bk = prm[base:base + 1, HIDDEN:2 * HIDDEN]
        bv = prm[base:base + 1, 2 * HIDDEN:3 * HIDDEN]
        bo = prm[base + 1:base + 2, 0:HIDDEN]
        g1 = prm[base + 1:base + 2, HIDDEN:2 * HIDDEN]
        bl1 = prm[base + 1:base + 2, 2 * HIDDEN:3 * HIDDEN]
        b1 = prm[base + 2:base + 3, 0:FFN]
        b2 = prm[base + 2:base + 3, FFN:FFN + HIDDEN]
        g2 = prm[base + 3:base + 4, 0:HIDDEN]
        bl2 = prm[base + 3:base + 4, HIDDEN:2 * HIDDEN]

        wqkv_l = qkvw_ref[l]                             # (3, H, H) bf16
        wo_l = wo_ref[l]                                 # (NH, dh, H) bf16

        x_bf = x.astype(jnp.bfloat16)
        # three separate projections (no lane slicing across a fused 3H output)
        q = (jnp.dot(x_bf, wqkv_l[0], preferred_element_type=jnp.float32) + bq).astype(jnp.bfloat16)
        k = (jnp.dot(x_bf, wqkv_l[1], preferred_element_type=jnp.float32) + bk).astype(jnp.bfloat16)
        v = (jnp.dot(x_bf, wqkv_l[2], preferred_element_type=jnp.float32) + bv).astype(jnp.bfloat16)

        # per-head attention; accumulate into the O-projection (no lane concat)
        attn = None
        for h in range(N_HEADS):
            lo = h * HEAD_DIM
            qh = q[:, lo:lo + HEAD_DIM]
            kh = k[:, lo:lo + HEAD_DIM]
            vh = v[:, lo:lo + HEAD_DIM]
            scores = jax.lax.dot_general(
                qh, kh, (((1,), (1,)), ((), ())),
                preferred_element_type=jnp.float32) * scale + bias       # (S, S) f32
            scores = scores - jnp.max(scores, axis=-1, keepdims=True)
            e = jnp.exp(scores)
            probs = e * pl.reciprocal(jnp.sum(e, axis=-1, keepdims=True), approx=True)
            ctx_h = jnp.dot(probs.astype(jnp.bfloat16), vh,
                            preferred_element_type=jnp.float32)          # (S, dh) f32
            part = jnp.dot(ctx_h.astype(jnp.bfloat16), wo_l[h],
                           preferred_element_type=jnp.float32)           # (S, H) f32
            attn = part if attn is None else attn + part
        attn = attn + bo

        x1 = _layernorm(attn + x, g1, bl1)

        hmid = jnp.dot(x1.astype(jnp.bfloat16), w1_ref[l],
                       preferred_element_type=jnp.float32) + b1
        hmid = jax.nn.gelu(hmid)  # TODO(synk): tanh-approx GELU; HF BERT uses erf-GELU (numerically very close)
        ffn_out = jnp.dot(hmid.astype(jnp.bfloat16), w2_ref[l],
                          preferred_element_type=jnp.float32) + b2
        x = _layernorm(ffn_out + x1, g2, bl2)

    # ---- 4 span heads (packed, padded to 8 lanes) + sigmoid ----
    head_b = prm[0:1, 2 * HIDDEN:2 * HIDDEN + HEAD_OUT]
    logits = jnp.dot(x.astype(jnp.bfloat16), hw_ref[...],
                     preferred_element_type=jnp.float32) + head_b        # (S, HEAD_OUT)
    o_ref[0] = jax.nn.sigmoid(logits)


# ---------------- wrapper ----------------
def bert_mrc_pallas(params, x_emb, mask_bias):
    B, S, _ = x_emb.shape
    wfull4 = lambda b: (0, 0, 0, 0)
    wfull3 = lambda b: (0, 0, 0)
    wfull2 = lambda b: (0, 0)
    return pl.pallas_call(
        _bert_mrc_kernel,
        out_shape=jax.ShapeDtypeStruct((B, S, HEAD_OUT), jnp.float32),
        grid=(B,),
        in_specs=[
            pl.BlockSpec((1, S, HIDDEN), lambda b: (b, 0, 0)),                     # embeddings
            pl.BlockSpec((1, 1, S), lambda b: (b, 0, 0)),                          # mask bias
            pl.BlockSpec((N_LAYERS, 3, HIDDEN, HIDDEN), wfull4),                   # Wq/Wk/Wv
            pl.BlockSpec((N_LAYERS, N_HEADS, HEAD_DIM, HIDDEN), wfull4),           # Wo (per head)
            pl.BlockSpec((N_LAYERS, HIDDEN, FFN), wfull3),                         # W1
            pl.BlockSpec((N_LAYERS, FFN, HIDDEN), wfull3),                         # W2
            pl.BlockSpec((HIDDEN, HEAD_OUT), wfull2),                              # span-head W
            pl.BlockSpec((PRM_ROWS, PRM_COLS), wfull2),                            # packed params
        ],
        out_specs=pl.BlockSpec((1, S, HEAD_OUT), lambda b: (b, 0, 0)),
        compiler_params=pltpu.CompilerParams(
            dimension_semantics=("parallel",),           # v7x: 2 TCs split the batch
            vmem_limit_bytes=VMEM_LIMIT,
        ),
    )(x_emb, mask_bias, params["qkv_w"], params["wo"], params["w1"], params["w2"],
      params["head_w"], params["prm"])


# ---------------- parameters (deterministic synthetic init) ----------------
def init_params(key):
    def nrm(k, shape):
        return 0.02 * jax.random.normal(k, shape, dtype=jnp.float32)

    keys = jax.random.split(key, 4 + N_LAYERS)

    prm = jnp.zeros((PRM_ROWS, PRM_COLS), jnp.float32)
    prm = prm.at[0, 0:HIDDEN].set(1.0)                   # emb LN gamma (beta / biases = 0)

    qkv_w, wo, w1, w2 = [], [], [], []
    for l in range(N_LAYERS):
        lk = jax.random.split(keys[4 + l], 6)
        qkv_w.append(jnp.stack([nrm(lk[0], (HIDDEN, HIDDEN)),
                                nrm(lk[1], (HIDDEN, HIDDEN)),
                                nrm(lk[2], (HIDDEN, HIDDEN))]))
        wo.append(nrm(lk[3], (HIDDEN, HIDDEN)).reshape(N_HEADS, HEAD_DIM, HIDDEN))
        w1.append(nrm(lk[4], (HIDDEN, FFN)))
        w2.append(nrm(lk[5], (FFN, HIDDEN)))
        base = 1 + 4 * l
        prm = prm.at[base + 1, HIDDEN:2 * HIDDEN].set(1.0)   # ln1 gamma
        prm = prm.at[base + 3, 0:HIDDEN].set(1.0)            # ln2 gamma

    # span heads: [s_start | s_end | o_start | o_end] packed in the first 4 of 8 lanes
    head_w = jnp.zeros((HIDDEN, HEAD_OUT), jnp.float32)
    head_w = head_w.at[:, :4].set(nrm(keys[3], (HIDDEN, 4)))

    return {
        "word_emb": nrm(keys[0], (VOCAB, HIDDEN)),
        "pos_emb": nrm(keys[1], (MAX_POS, HIDDEN)),
        "type_emb": nrm(keys[2], (TYPE_VOCAB, HIDDEN)),
        "qkv_w": jnp.stack(qkv_w).astype(jnp.bfloat16),      # (L, 3, H, H)
        "wo": jnp.stack(wo).astype(jnp.bfloat16),            # (L, NH, dh, H)
        "w1": jnp.stack(w1).astype(jnp.bfloat16),            # (L, H, FFN)
        "w2": jnp.stack(w2).astype(jnp.bfloat16),            # (L, FFN, H)
        "head_w": head_w.astype(jnp.bfloat16),               # (H, HEAD_OUT)
        "prm": prm,                                          # (PRM_ROWS, PRM_COLS) f32
    }


# ---------------- forward (matches bertMRC.forward semantics) ----------------
def bert_mrc_forward(params, input_ids, input_mask, input_seg, is_training=False):
    B, S = input_ids.shape
    # embedding gathers stay in JAX (glue); everything after is one fused Pallas kernel
    pos_ids = jnp.broadcast_to(jnp.arange(S, dtype=jnp.int32)[None, :], (B, S))
    emb = (jnp.take(params["word_emb"], input_ids, axis=0)
           + jnp.take(params["pos_emb"], pos_ids, axis=0)
           + jnp.take(params["type_emb"], input_seg, axis=0))            # (B, S, H) f32
    x_emb = emb.astype(jnp.bfloat16)
    mask_bias = ((1.0 - input_mask.astype(jnp.float32)) * NEG_INF).reshape(B, 1, S)

    probs = bert_mrc_pallas(params, x_emb, mask_bias)                    # (B, S, 8) f32
    # TODO(synk): dropout omitted (inference semantics; identity in eval / is_training ignored).
    s_startlogits = probs[..., 0:1]
    s_endlogits = probs[..., 1:2]
    o_startlogits = probs[..., 2:3]
    o_endlogits = probs[..., 3:4]
    return (s_startlogits, s_endlogits, o_startlogits, o_endlogits)


# ---------------- pure-JAX reference (f32) for a correctness check ----------------
def _reference_forward(params, input_ids, input_mask, input_seg):
    B, S = input_ids.shape
    prm = params["prm"]

    def ln(x, g, b):
        mu = x.mean(-1, keepdims=True)
        var = ((x - mu) ** 2).mean(-1, keepdims=True)
        return (x - mu) / jnp.sqrt(var + LN_EPS) * g + b

    pos_ids = jnp.broadcast_to(jnp.arange(S, dtype=jnp.int32)[None, :], (B, S))
    x = (jnp.take(params["word_emb"], input_ids, axis=0)
         + jnp.take(params["pos_emb"], pos_ids, axis=0)
         + jnp.take(params["type_emb"], input_seg, axis=0))
    x = ln(x, prm[0, 0:HIDDEN], prm[0, HIDDEN:2 * HIDDEN])
    bias = ((1.0 - input_mask.astype(jnp.float32)) * NEG_INF)[:, None, None, :]
    for l in range(N_LAYERS):
        base = 1 + 4 * l
        wq = params["qkv_w"][l, 0].astype(jnp.float32)
        wk = params["qkv_w"][l, 1].astype(jnp.float32)
        wv = params["qkv_w"][l, 2].astype(jnp.float32)
        wo = params["wo"][l].astype(jnp.float32).reshape(HIDDEN, HIDDEN)
        q = x @ wq + prm[base, 0:HIDDEN]
        k = x @ wk + prm[base, HIDDEN:2 * HIDDEN]
        v = x @ wv + prm[base, 2 * HIDDEN:3 * HIDDEN]
        split = lambda t: t.reshape(B, S, N_HEADS, HEAD_DIM).transpose(0, 2, 1, 3)
        scores = jnp.einsum("bhqd,bhkd->bhqk", split(q), split(k)) / math.sqrt(HEAD_DIM) + bias
        p = jax.nn.softmax(scores, axis=-1)
        ctx = jnp.einsum("bhqk,bhkd->bhqd", p, split(v)).transpose(0, 2, 1, 3).reshape(B, S, HIDDEN)
        attn = ctx @ wo + prm[base + 1, 0:HIDDEN]
        x1 = ln(attn + x, prm[base + 1, HIDDEN:2 * HIDDEN], prm[base + 1, 2 * HIDDEN:3 * HIDDEN])
        h = jax.nn.gelu(x1 @ params["w1"][l].astype(jnp.float32) + prm[base + 2, 0:FFN])
        f = h @ params["w2"][l].astype(jnp.float32) + prm[base + 2, FFN:FFN + HIDDEN]
        x = ln(f + x1, prm[base + 3, 0:HIDDEN], prm[base + 3, HIDDEN:2 * HIDDEN])
    logits = x @ params["head_w"].astype(jnp.float32) + prm[0, 2 * HIDDEN:2 * HIDDEN + HEAD_OUT]
    return jax.nn.sigmoid(logits)


if __name__ == "__main__":
    key = jax.random.PRNGKey(0)
    pkey, ikey, skey = jax.random.split(key, 3)

    B, S = 2, 8
    params = init_params(pkey)
    input_ids = jax.random.randint(ikey, (B, S), 0, VOCAB, dtype=jnp.int32)
    input_mask = jnp.array([[1] * S, [1] * (S - 2) + [0, 0]], dtype=jnp.int32)
    input_seg = jax.random.randint(skey, (B, S), 0, TYPE_VOCAB, dtype=jnp.int32)

    outs = bert_mrc_forward(params, input_ids, input_mask, input_seg, is_training=False)
    outs = [jax.block_until_ready(o) for o in outs]

    ref = _reference_forward(params, input_ids, input_mask, input_seg)   # (B, S, 8)
    for o in outs:
        assert o.shape == (B, S, 1), o.shape
        assert bool(jnp.all(jnp.isfinite(o)))
        assert bool(jnp.all((o >= 0.0) & (o <= 1.0)))                    # sigmoid outputs
    kernel_probs = jnp.concatenate(outs, axis=-1)                        # (B, S, 4)
    max_diff = float(jnp.max(jnp.abs(kernel_probs - ref[..., :4])))
    assert max_diff < 5e-2, max_diff                                     # bf16 / approx-recip tolerance

    print("KERNEL_OK")
</pallas_src>

<mosaic_0001>
module attributes {stable_mosaic.version = 11 : i64} {
  func.func @_bert_mrc_kernel(%arg0: i32, %arg1: memref<1x8x32xbf16, #tpu.memory_space<vmem>>, %arg2: memref<1x1x8xf32, #tpu.memory_space<vmem>>, %arg3: memref<2x3x32x32xbf16, #tpu.memory_space<vmem>>, %arg4: memref<2x2x16x32xbf16, #tpu.memory_space<vmem>>, %arg5: memref<2x32x64xbf16, #tpu.memory_space<vmem>>, %arg6: memref<2x64x32xbf16, #tpu.memory_space<vmem>>, %arg7: memref<32x8xbf16, #tpu.memory_space<vmem>>, %arg8: memref<9x96xf32, #tpu.memory_space<vmem>>, %arg9: memref<1x8x8xf32, #tpu.memory_space<vmem>>) attributes {dimension_semantics = [#tpu.dimension_semantics<parallel>], iteration_bounds = array<i64: 2>, scalar_prefetch = 0 : i64, scratch_operands = 0 : i64, tpu.core_type = #tpu.core_type<tc>, window_params = [{transform_indices = @transform_0, window_bounds = array<i64: 1, 8, 32>}, {transform_indices = @transform_1, window_bounds = array<i64: 1, 1, 8>}, {pipeline_mode = #tpu.pipeline_mode<synchronous>, transform_indices = @transform_2, window_bounds = array<i64: 2, 3, 32, 32>}, {pipeline_mode = #tpu.pipeline_mode<synchronous>, transform_indices = @transform_3, window_bounds = array<i64: 2, 2, 16, 32>}, {pipeline_mode = #tpu.pipeline_mode<synchronous>, transform_indices = @transform_4, window_bounds = array<i64: 2, 32, 64>}, {pipeline_mode = #tpu.pipeline_mode<synchronous>, transform_indices = @transform_5, window_bounds = array<i64: 2, 64, 32>}, {pipeline_mode = #tpu.pipeline_mode<synchronous>, transform_indices = @transform_6, window_bounds = array<i64: 32, 8>}, {pipeline_mode = #tpu.pipeline_mode<synchronous>, transform_indices = @transform_7, window_bounds = array<i64: 9, 96>}, {transform_indices = @transform_8, window_bounds = array<i64: 1, 8, 8>}]} {
    %c0 = arith.constant 0 : index
    %c0_0 = arith.constant 0 : index
    %0 = vector.load %arg8[%c0, %c0_0] : memref<9x96xf32, #tpu.memory_space<vmem>>, vector<9x96xf32>
    %c0_1 = arith.constant 0 : index
    %c0_2 = arith.constant 0 : index
    %c0_3 = arith.constant 0 : index
    %1 = vector.load %arg2[%c0_1, %c0_2, %c0_3] : memref<1x1x8xf32, #tpu.memory_space<vmem>>, vector<1x1x8xf32>
    %2 = vector.shape_cast %1 : vector<1x1x8xf32> to vector<1x8xf32>
    %c0_4 = arith.constant 0 : index
    %c0_5 = arith.constant 0 : index
    %c0_6 = arith.constant 0 : index
    %3 = vector.load %arg1[%c0_4, %c0_5, %c0_6] : memref<1x8x32xbf16, #tpu.memory_space<vmem>>, vector<1x8x32xbf16>
    %4 = vector.shape_cast %3 : vector<1x8x32xbf16> to vector<8x32xbf16>
    %5 = arith.extf %4 : vector<8x32xbf16> to vector<8x32xf32>
    %6 = vector.extract_strided_slice %0 {offsets = [0, 0], sizes = [1, 32], strides = [1, 1]} : vector<9x96xf32> to vector<1x32xf32>
    %7 = vector.extract_strided_slice %0 {offsets = [0, 32], sizes = [1, 32], strides = [1, 1]} : vector<9x96xf32> to vector<1x32xf32>
    %cst = arith.constant dense<0.000000e+00> : vector<8xf32>
    %8 = vector.multi_reduction <add>, %5, %cst [1] : vector<8x32xf32> to vector<8xf32>
    %9 = vector.shape_cast %8 : vector<8xf32> to vector<8x1xf32>
    %cst_7 = arith.constant 3.200000e+01 : f32
    %10 = vector.broadcast %cst_7 : f32 to vector<8x1xf32>
    %11 = arith.divf %9, %10 : vector<8x1xf32>
    %12 = vector.broadcast %11 : vector<8x1xf32> to vector<8x32xf32>
    %13 = arith.subf %5, %12 : vector<8x32xf32>
    %14 = arith.mulf %13, %13 : vector<8x32xf32>
    %cst_8 = arith.constant dense<0.000000e+00> : vector<8xf32>
    %15 = vector.multi_reduction <add>, %14, %cst_8 [1] : vector<8x32xf32> to vector<8xf32>
    %16 = vector.shape_cast %15 : vector<8xf32> to vector<8x1xf32>
    %cst_9 = arith.constant 3.200000e+01 : f32
    %17 = vector.broadcast %cst_9 : f32 to vector<8x1xf32>
    %18 = arith.divf %16, %17 : vector<8x1xf32>
    %19 = vector.broadcast %11 : vector<8x1xf32> to vector<8x32xf32>
    %20 = arith.subf %5, %19 : vector<8x32xf32>
    %cst_10 = arith.constant 9.99999996E-13 : f32
    %21 = vector.broadcast %cst_10 : f32 to vector<8x1xf32>
    %22 = arith.addf %18, %21 : vector<8x1xf32>
    %23 = math.rsqrt %22 : vector<8x1xf32>
    %24 = vector.broadcast %23 : vector<8x1xf32> to vector<8x32xf32>
    %25 = arith.mulf %20, %24 : vector<8x32xf32>
    %26 = vector.broadcast %6 : vector<1x32xf32> to vector<8x32xf32>
    %27 = arith.mulf %25, %26 : vector<8x32xf32>
    %28 = vector.broadcast %7 : vector<1x32xf32> to vector<8x32xf32>
    %29 = arith.addf %27, %28 : vector<8x32xf32>
    %30 = vector.extract_strided_slice %0 {offsets = [1, 0], sizes = [1, 32], strides = [1, 1]} : vector<9x96xf32> to vector<1x32xf32>
    %31 = vector.extract_strided_slice %0 {offsets = [1, 32], sizes = [1, 32], strides = [1, 1]} : vector<9x96xf32> to vector<1x32xf32>
    %32 = vector.extract_strided_slice %0 {offsets = [1, 64], sizes = [1, 32], strides = [1, 1]} : vector<9x96xf32> to vector<1x32xf32>
    %33 = vector.extract_strided_slice %0 {offsets = [2, 0], sizes = [1, 32], strides = [1, 1]} : vector<9x96xf32> to vector<1x32xf32>
    %34 = vector.extract_strided_slice %0 {offsets = [2, 32], sizes = [1, 32], strides = [1, 1]} : vector<9x96xf32> to vector<1x32xf32>
    %35 = vector.extract_strided_slice %0 {offsets = [2, 64], sizes = [1, 32], strides = [1, 1]} : vector<9x96xf32> to vector<1x32xf32>
    %36 = vector.extract_strided_slice %0 {offsets = [3, 0], sizes = [1, 64], strides = [1, 1]} : vector<9x96xf32> to vector<1x64xf32>
    %37 = vector.extract_strided_slice %0 {offsets = [3, 64], sizes = [1, 32], strides = [1, 1]} : vector<9x96xf32> to vector<1x32xf32>
    %38 = vector.extract_strided_slice %0 {offsets = [4, 0], sizes = [1, 32], strides = [1, 1]} : vector<9x96xf32> to vector<1x32xf32>
    %39 = vector.extract_strided_slice %0 {offsets = [4, 32], sizes = [1, 32], strides = [1, 1]} : vector<9x96xf32> to vector<1x32xf32>
    %c0_11 = arith.constant 0 : index
    %c0_12 = arith.constant 0 : index
    %c0_13 = arith.constant 0 : index
    %c0_14 = arith.constant 0 : index
    %40 = vector.load %arg3[%c0_11, %c0_12, %c0_13, %c0_14] : memref<2x3x32x32xbf16, #tpu.memory_space<vmem>>, vector<1x3x32x32xbf16>
    %41 = vector.shape_cast %40 : vector<1x3x32x32xbf16> to vector<3x32x32xbf16>
    %c0_15 = arith.constant 0 : index
    %c0_16 = arith.constant 0 : index
    %c0_17 = arith.constant 0 : index
    %c0_18 = arith.constant 0 : index
    %42 = vector.load %arg4[%c0_15, %c0_16, %c0_17, %c0_18] : memref<2x2x16x32xbf16, #tpu.memory_space<vmem>>, vector<1x2x16x32xbf16>
    %43 = vector.shape_cast %42 : vector<1x2x16x32xbf16> to vector<2x16x32xbf16>
    %44 = arith.truncf %29 : vector<8x32xf32> to vector<8x32xbf16>
    %45 = vector.extract_strided_slice %41 {offsets = [0, 0, 0], sizes = [1, 32, 32], strides = [1, 1, 1]} : vector<3x32x32xbf16> to vector<1x32x32xbf16>
    %46 = vector.shape_cast %45 : vector<1x32x32xbf16> to vector<32x32xbf16>
    %cst_19 = arith.constant dense<0.000000e+00> : vector<8x32xf32>
    %47 = tpu.matmul %44, %46, %cst_19 {dimension_numbers = #tpu.dot_dimension_numbers<[1], [0], [0], [1], [0, 0, 1, 1], [], []>} : vector<8x32xbf16>, vector<32x32xbf16>, vector<8x32xf32> -> vector<8x32xf32>
    %48 = vector.broadcast %30 : vector<1x32xf32> to vector<8x32xf32>
    %49 = arith.addf %47, %48 : vector<8x32xf32>
    %50 = arith.truncf %49 : vector<8x32xf32> to vector<8x32xbf16>
    %51 = vector.extract_strided_slice %41 {offsets = [1, 0, 0], sizes = [1, 32, 32], strides = [1, 1, 1]} : vector<3x32x32xbf16> to vector<1x32x32xbf16>
    %52 = vector.shape_cast %51 : vector<1x32x32xbf16> to vector<32x32xbf16>
    %cst_20 = arith.constant dense<0.000000e+00> : vector<8x32xf32>
    %53 = tpu.matmul %44, %52, %cst_20 {dimension_numbers = #tpu.dot_dimension_numbers<[1], [0], [0], [1], [0, 0, 1, 1], [], []>} : vector<8x32xbf16>, vector<32x32xbf16>, vector<8x32xf32> -> vector<8x32xf32>
    %54 = vector.broadcast %31 : vector<1x32xf32> to vector<8x32xf32>
    %55 = arith.addf %53, %54 : vector<8x32xf32>
    %56 = arith.truncf %55 : vector<8x32xf32> to vector<8x32xbf16>
    %57 = vector.extract_strided_slice %41 {offsets = [2, 0, 0], sizes = [1, 32, 32], strides = [1, 1, 1]} : vector<3x32x32xbf16> to vector<1x32x32xbf16>
    %58 = vector.shape_cast %57 : vector<1x32x32xbf16> to vector<32x32xbf16>
    %cst_21 = arith.constant dense<0.000000e+00> : vector<8x32xf32>
    %59 = tpu.matmul %44, %58, %cst_21 {dimension_numbers = #tpu.dot_dimension_numbers<[1], [0], [0], [1], [0, 0, 1, 1], [], []>} : vector<8x32xbf16>, vector<32x32xbf16>, vector<8x32xf32> -> vector<8x32xf32>
    %60 = vector.broadcast %32 : vector<1x32xf32> to vector<8x32xf32>
    %61 = arith.addf %59, %60 : vector<8x32xf32>
    %62 = arith.truncf %61 : vector<8x32xf32> to vector<8x32xbf16>
    %63 = vector.extract_strided_slice %50 {offsets = [0, 0], sizes = [8, 16], strides = [1, 1]} : vector<8x32xbf16> to vector<8x16xbf16>
    %64 = vector.extract_strided_slice %56 {offsets = [0, 0], sizes = [8, 16], strides = [1, 1]} : vector<8x32xbf16> to vector<8x16xbf16>
    %65 = vector.extract_strided_slice %62 {offsets = [0, 0], sizes = [8, 16], strides = [1, 1]} : vector<8x32xbf16> to vector<8x16xbf16>
    %cst_22 = arith.constant dense<0.000000e+00> : vector<8x8xf32>
    %66 = tpu.matmul %63, %64, %cst_22 {dimension_numbers = #tpu.dot_dimension_numbers<[1], [1], [0], [0], [0, 0, 1, 0], [], []>} : vector<8x16xbf16>, vector<8x16xbf16>, vector<8x8xf32> -> vector<8x8xf32>
    %cst_23 = arith.constant 2.500000e-01 : f32
    %67 = vector.broadcast %cst_23 : f32 to vector<8x8xf32>
    %68 = arith.mulf %66, %67 : vector<8x8xf32>
    %69 = vector.broadcast %2 : vector<1x8xf32> to vector<8x8xf32>
    %70 = arith.addf %68, %69 : vector<8x8xf32>
    %cst_24 = arith.constant dense<0xFF800000> : vector<8xf32>
    %71 = vector.multi_reduction <maximumf>, %70, %cst_24 [1] : vector<8x8xf32> to vector<8xf32>
    %72 = vector.shape_cast %71 : vector<8xf32> to vector<8x1xf32>
    %73 = vector.broadcast %72 : vector<8x1xf32> to vector<8x8xf32>
    %74 = arith.subf %70, %73 : vector<8x8xf32>
    %75 = math.exp %74 : vector<8x8xf32>
    %cst_25 = arith.constant dense<0.000000e+00> : vector<8xf32>
    %76 = vector.multi_reduction <add>, %75, %cst_25 [1] : vector<8x8xf32> to vector<8xf32>
    %77 = vector.shape_cast %76 : vector<8xf32> to vector<8x1xf32>
    %78 = tpu.reciprocal %77 {approx = true} : vector<8x1xf32> -> vector<8x1xf32>
    %79 = vector.broadcast %78 : vector<8x1xf32> to vector<8x8xf32>
    %80 = arith.mulf %75, %79 : vector<8x8xf32>
    %81 = arith.truncf %80 : vector<8x8xf32> to vector<8x8xbf16>
    %cst_26 = arith.constant dense<0.000000e+00> : vector<8x16xf32>
    %82 = tpu.matmul %81, %65, %cst_26 {dimension_numbers = #tpu.dot_dimension_numbers<[1], [0], [0], [1], [0, 0, 1, 1], [], []>} : vector<8x8xbf16>, vector<8x16xbf16>, vector<8x16xf32> -> vector<8x16xf32>
    %83 = arith.truncf %82 : vector<8x16xf32> to vector<8x16xbf16>
    %84 = vector.extract_strided_slice %43 {offsets = [0, 0, 0], sizes = [1, 16, 32], strides = [1, 1, 1]} : vector<2x16x32xbf16> to vector<1x16x32xbf16>
    %85 = vector.shape_cast %84 : vector<1x16x32xbf16> to vector<16x32xbf16>
    %cst_27 = arith.constant dense<0.000000e+00> : vector<8x32xf32>
    %86 = tpu.matmul %83, %85, %cst_27 {dimension_numbers = #tpu.dot_dimension_numbers<[1], [0], [0], [1], [0, 0, 1, 1], [], []>} : vector<8x16xbf16>, vector<16x32xbf16>, vector<8x32xf32> -> vector<8x32xf32>
    %87 = vector.extract_strided_slice %50 {offsets = [0, 16], sizes = [8, 16], strides = [1, 1]} : vector<8x32xbf16> to vector<8x16xbf16>
    %88 = vector.extract_strided_slice %56 {offsets = [0, 16], sizes = [8, 16], strides = [1, 1]} : vector<8x32xbf16> to vector<8x16xbf16>
    %89 = vector.extract_strided_slice %62 {offsets = [0, 16], sizes = [8, 16], strides = [1, 1]} : vector<8x32xbf16> to vector<8x16xbf16>
    %cst_28 = arith.constant dense<0.000000e+00> : vector<8x8xf32>
    %90 = tpu.matmul %87, %88, %cst_28 {dimension_numbers = #tpu.dot_dimension_numbers<[1], [1], [0], [0], [0, 0, 1, 0], [], []>} : vector<8x16xbf16>, vector<8x16xbf16>, vector<8x8xf32> -> vector<8x8xf32>
    %cst_29 = arith.constant 2.500000e-01 : f32
    %91 = vector.broadcast %cst_29 : f32 to vector<8x8xf32>
    %92 = arith.mulf %90, %91 : vector<8x8xf32>
    %93 = vector.broadcast %2 : vector<1x8xf32> to vector<8x8xf32>
    %94 = arith.addf %92, %93 : vector<8x8xf32>
    %cst_30 = arith.constant dense<0xFF800000> : vector<8xf32>
    %95 = vector.multi_reduction <maximumf>, %94, %cst_30 [1] : vector<8x8xf32> to vector<8xf32>
    %96 = vector.shape_cast %95 : vector<8xf32> to vector<8x1xf32>
    %97 = vector.broadcast %96 : vector<8x1xf32> to vector<8x8xf32>
    %98 = arith.subf %94, %97 : vector<8x8xf32>
    %99 = math.exp %98 : vector<8x8xf32>
    %cst_31 = arith.constant dense<0.000000e+00> : vector<8xf32>
    %100 = vector.multi_reduction <add>, %99, %cst_31 [1] : vector<8x8xf32> to vector<8xf32>
    %101 = vector.shape_cast %100 : vector<8xf32> to vector<8x1xf32>
    %102 = tpu.reciprocal %101 {approx = true} : vector<8x1xf32> -> vector<8x1xf32>
    %103 = vector.broadcast %102 : vector<8x1xf32> to vector<8x8xf32>
    %104 = arith.mulf %99, %103 : vector<8x8xf32>
    %105 = arith.truncf %104 : vector<8x8xf32> to vector<8x8xbf16>
    %cst_32 = arith.constant dense<0.000000e+00> : vector<8x16xf32>
    %106 = tpu.matmul %105, %89, %cst_32 {dimension_numbers = #tpu.dot_dimension_numbers<[1], [0], [0], [1], [0, 0, 1, 1], [], []>} : vector<8x8xbf16>, vector<8x16xbf16>, vector<8x16xf32> -> vector<8x16xf32>
    %107 = arith.truncf %106 : vector<8x16xf32> to vector<8x16xbf16>
    %108 = vector.extract_strided_slice %43 {offsets = [1, 0, 0], sizes = [1, 16, 32], strides = [1, 1, 1]} : vector<2x16x32xbf16> to vector<1x16x32xbf16>
    %109 = vector.shape_cast %108 : vector<1x16x32xbf16> to vector<16x32xbf16>
    %cst_33 = arith.constant dense<0.000000e+00> : vector<8x32xf32>
    %110 = tpu.matmul %107, %109, %cst_33 {dimension_numbers = #tpu.dot_dimension_numbers<[1], [0], [0], [1], [0, 0, 1, 1], [], []>} : vector<8x16xbf16>, vector<16x32xbf16>, vector<8x32xf32> -> vector<8x32xf32>
    %111 = arith.addf %86, %110 : vector<8x32xf32>
    %112 = vector.broadcast %33 : vector<1x32xf32> to vector<8x32xf32>
    %113 = arith.addf %111, %112 : vector<8x32xf32>
    %114 = arith.addf %113, %29 : vector<8x32xf32>
    %cst_34 = arith.constant dense<0.000000e+00> : vector<8xf32>
    %115 = vector.multi_reduction <add>, %114, %cst_34 [1] : vector<8x32xf32> to vector<8xf32>
    %116 = vector.shape_cast %115 : vector<8xf32> to vector<8x1xf32>
    %cst_35 = arith.constant 3.200000e+01 : f32
    %117 = vector.broadcast %cst_35 : f32 to vector<8x1xf32>
    %118 = arith.divf %116, %117 : vector<8x1xf32>
    %119 = vector.broadcast %118 : vector<8x1xf32> to vector<8x32xf32>
    %120 = arith.subf %114, %119 : vector<8x32xf32>
    %121 = arith.mulf %120, %120 : vector<8x32xf32>
    %cst_36 = arith.constant dense<0.000000e+00> : vector<8xf32>
    %122 = vector.multi_reduction <add>, %121, %cst_36 [1] : vector<8x32xf32> to vector<8xf32>
    %123 = vector.shape_cast %122 : vector<8xf32> to vector<8x1xf32>
    %cst_37 = arith.constant 3.200000e+01 : f32
    %124 = vector.broadcast %cst_37 : f32 to vector<8x1xf32>
    %125 = arith.divf %123, %124 : vector<8x1xf32>
    %126 = vector.broadcast %118 : vector<8x1xf32> to vector<8x32xf32>
    %127 = arith.subf %114, %126 : vector<8x32xf32>
    %cst_38 = arith.constant 9.99999996E-13 : f32
    %128 = vector.broadcast %cst_38 : f32 to vector<8x1xf32>
    %129 = arith.addf %125, %128 : vector<8x1xf32>
    %130 = math.rsqrt %129 : vector<8x1xf32>
    %131 = vector.broadcast %130 : vector<8x1xf32> to vector<8x32xf32>
    %132 = arith.mulf %127, %131 : vector<8x32xf32>
    %133 = vector.broadcast %34 : vector<1x32xf32> to vector<8x32xf32>
    %134 = arith.mulf %132, %133 : vector<8x32xf32>
    %135 = vector.broadcast %35 : vector<1x32xf32> to vector<8x32xf32>
    %136 = arith.addf %134, %135 : vector<8x32xf32>
    %137 = arith.truncf %136 : vector<8x32xf32> to vector<8x32xbf16>
    %c0_39 = arith.constant 0 : index
    %c0_40 = arith.constant 0 : index
    %c0_41 = arith.constant 0 : index
    %138 = vector.load %arg5[%c0_39, %c0_40, %c0_41] : memref<2x32x64xbf16, #tpu.memory_space<vmem>>, vector<1x32x64xbf16>
    %139 = vector.shape_cast %138 : vector<1x32x64xbf16> to vector<32x64xbf16>
    %cst_42 = arith.constant dense<0.000000e+00> : vector<8x64xf32>
    %140 = tpu.matmul %137, %139, %cst_42 {dimension_numbers = #tpu.dot_dimension_numbers<[1], [0], [0], [1], [0, 0, 1, 1], [], []>} : vector<8x32xbf16>, vector<32x64xbf16>, vector<8x64xf32> -> vector<8x64xf32>
    %141 = vector.broadcast %36 : vector<1x64xf32> to vector<8x64xf32>
    %142 = arith.addf %140, %141 : vector<8x64xf32>
    %143 = arith.mulf %142, %142 : vector<8x64xf32>
    %144 = arith.mulf %142, %143 : vector<8x64xf32>
    %cst_43 = arith.constant 4.471500e-02 : f32
    %145 = vector.broadcast %cst_43 : f32 to vector<8x64xf32>
    %146 = arith.mulf %145, %144 : vector<8x64xf32>
    %147 = arith.addf %142, %146 : vector<8x64xf32>
    %cst_44 = arith.constant 0.797884583 : f32
    %148 = vector.broadcast %cst_44 : f32 to vector<8x64xf32>
    %149 = arith.mulf %148, %147 : vector<8x64xf32>
    %150 = math.tanh %149 : vector<8x64xf32>
    %cst_45 = arith.constant 1.000000e+00 : f32
    %151 = vector.broadcast %cst_45 : f32 to vector<8x64xf32>
    %152 = arith.addf %151, %150 : vector<8x64xf32>
    %cst_46 = arith.constant 5.000000e-01 : f32
    %153 = vector.broadcast %cst_46 : f32 to vector<8x64xf32>
    %154 = arith.mulf %153, %152 : vector<8x64xf32>
    %155 = arith.mulf %142, %154 : vector<8x64xf32>
    %156 = arith.truncf %155 : vector<8x64xf32> to vector<8x64xbf16>
    %c0_47 = arith.constant 0 : index
    %c0_48 = arith.constant 0 : index
    %c0_49 = arith.constant 0 : index
    %157 = vector.load %arg6[%c0_47, %c0_48, %c0_49] : memref<2x64x32xbf16, #tpu.memory_space<vmem>>, vector<1x64x32xbf16>
    %158 = vector.shape_cast %157 : vector<1x64x32xbf16> to vector<64x32xbf16>
    %cst_50 = arith.constant dense<0.000000e+00> : vector<8x32xf32>
    %159 = tpu.matmul %156, %158, %cst_50 {dimension_numbers = #tpu.dot_dimension_numbers<[1], [0], [0], [1], [0, 0, 1, 1], [], []>} : vector<8x64xbf16>, vector<64x32xbf16>, vector<8x32xf32> -> vector<8x32xf32>
    %160 = vector.broadcast %37 : vector<1x32xf32> to vector<8x32xf32>
    %161 = arith.addf %159, %160 : vector<8x32xf32>
    %162 = arith.addf %161, %136 : vector<8x32xf32>
    %cst_51 = arith.constant dense<0.000000e+00> : vector<8xf32>
    %163 = vector.multi_reduction <add>, %162, %cst_51 [1] : vector<8x32xf32> to vector<8xf32>
    %164 = vector.shape_cast %163 : vector<8xf32> to vector<8x1xf32>
    %cst_52 = arith.constant 3.200000e+01 : f32
    %165 = vector.broadcast %cst_52 : f32 to vector<8x1xf32>
    %166 = arith.divf %164, %165 : vector<8x1xf32>
    %167 = vector.broadcast %166 : vector<8x1xf32> to vector<8x32xf32>
    %168 = arith.subf %162, %167 : vector<8x32xf32>
    %169 = arith.mulf %168, %168 : vector<8x32xf32>
    %cst_53 = arith.constant dense<0.000000e+00> : vector<8xf32>
    %170 = vector.multi_reduction <add>, %169, %cst_53 [1] : vector<8x32xf32> to vector<8xf32>
    %171 = vector.shape_cast %170 : vector<8xf32> to vector<8x1xf32>
    %cst_54 = arith.constant 3.200000e+01 : f32
    %172 = vector.broadcast %cst_54 : f32 to vector<8x1xf32>
    %173 = arith.divf %171, %172 : vector<8x1xf32>
    %174 = vector.broadcast %166 : vector<8x1xf32> to vector<8x32xf32>
    %175 = arith.subf %162, %174 : vector<8x32xf32>
    %cst_55 = arith.constant 9.99999996E-13 : f32
    %176 = vector.broadcast %cst_55 : f32 to vector<8x1xf32>
    %177 = arith.addf %173, %176 : vector<8x1xf32>
    %178 = math.rsqrt %177 : vector<8x1xf32>
    %179 = vector.broadcast %178 : vector<8x1xf32> to vector<8x32xf32>
    %180 = arith.mulf %175, %179 : vector<8x32xf32>
    %181 = vector.broadcast %38 : vector<1x32xf32> to vector<8x32xf32>
    %182 = arith.mulf %180, %181 : vector<8x32xf32>
    %183 = vector.broadcast %39 : vector<1x32xf32> to vector<8x32xf32>
    %184 = arith.addf %182, %183 : vector<8x32xf32>
    %185 = vector.extract_strided_slice %0 {offsets = [5, 0], sizes = [1, 32], strides = [1, 1]} : vector<9x96xf32> to vector<1x32xf32>
    %186 = vector.extract_strided_slice %0 {offsets = [5, 32], sizes = [1, 32], strides = [1, 1]} : vector<9x96xf32> to vector<1x32xf32>
    %187 = vector.extract_strided_slice %0 {offsets = [5, 64], sizes = [1, 32], strides = [1, 1]} : vector<9x96xf32> to vector<1x32xf32>
    %188 = vector.extract_strided_slice %0 {offsets = [6, 0], sizes = [1, 32], strides = [1, 1]} : vector<9x96xf32> to vector<1x32xf32>
    %189 = vector.extract_strided_slice %0 {offsets = [6, 32], sizes = [1, 32], strides = [1, 1]} : vector<9x96xf32> to vector<1x32xf32>
    %190 = vector.extract_strided_slice %0 {offsets = [6, 64], sizes = [1, 32], strides = [1, 1]} : vector<9x96xf32> to vector<1x32xf32>
    %191 = vector.extract_strided_slice %0 {offsets = [7, 0], sizes = [1, 64], strides = [1, 1]} : vector<9x96xf32> to vector<1x64xf32>
    %192 = vector.extract_strided_slice %0 {offsets = [7, 64], sizes = [1, 32], strides = [1, 1]} : vector<9x96xf32> to vector<1x32xf32>
    %193 = vector.extract_strided_slice %0 {offsets = [8, 0], sizes = [1, 32], strides = [1, 1]} : vector<9x96xf32> to vector<1x32xf32>
    %194 = vector.extract_strided_slice %0 {offsets = [8, 32], sizes = [1, 32], strides = [1, 1]} : vector<9x96xf32> to vector<1x32xf32>
    %c1 = arith.constant 1 : index
    %c0_56 = arith.constant 0 : index
    %c0_57 = arith.constant 0 : index
    %c0_58 = arith.constant 0 : index
    %195 = vector.load %arg3[%c1, %c0_56, %c0_57, %c0_58] : memref<2x3x32x32xbf16, #tpu.memory_space<vmem>>, vector<1x3x32x32xbf16>
    %196 = vector.shape_cast %195 : vector<1x3x32x32xbf16> to vector<3x32x32xbf16>
    %c1_59 = arith.constant 1 : index
    %c0_60 = arith.constant 0 : index
    %c0_61 = arith.constant 0 : index
    %c0_62 = arith.constant 0 : index
    %197 = vector.load %arg4[%c1_59, %c0_60, %c0_61, %c0_62] : memref<2x2x16x32xbf16, #tpu.memory_space<vmem>>, vector<1x2x16x32xbf16>
    %198 = vector.shape_cast %197 : vector<1x2x16x32xbf16> to vector<2x16x32xbf16>
    %199 = arith.truncf %184 : vector<8x32xf32> to vector<8x32xbf16>
    %200 = vector.extract_strided_slice %196 {offsets = [0, 0, 0], sizes = [1, 32, 32], strides = [1, 1, 1]} : vector<3x32x32xbf16> to vector<1x32x32xbf16>
    %201 = vector.shape_cast %200 : vector<1x32x32xbf16> to vector<32x32xbf16>
    %cst_63 = arith.constant dense<0.000000e+00> : vector<8x32xf32>
    %202 = tpu.matmul %199, %201, %cst_63 {dimension_numbers = #tpu.dot_dimension_numbers<[1], [0], [0], [1], [0, 0, 1, 1], [], []>} : vector<8x32xbf16>, vector<32x32xbf16>, vector<8x32xf32> -> vector<8x32xf32>
    %203 = vector.broadcast %185 : vector<1x32xf32> to vector<8x32xf32>
    %204 = arith.addf %202, %203 : vector<8x32xf32>
    %205 = arith.truncf %204 : vector<8x32xf32> to vector<8x32xbf16>
    %206 = vector.extract_strided_slice %196 {offsets = [1, 0, 0], sizes = [1, 32, 32], strides = [1, 1, 1]} : vector<3x32x32xbf16> to vector<1x32x32xbf16>
    %207 = vector.shape_cast %206 : vector<1x32x32xbf16> to vector<32x32xbf16>
    %cst_64 = arith.constant dense<0.000000e+00> : vector<8x32xf32>
    %208 = tpu.matmul %199, %207, %cst_64 {dimension_numbers = #tpu.dot_dimension_numbers<[1], [0], [0], [1], [0, 0, 1, 1], [], []>} : vector<8x32xbf16>, vector<32x32xbf16>, vector<8x32xf32> -> vector<8x32xf32>
    %209 = vector.broadcast %186 : vector<1x32xf32> to vector<8x32xf32>
    %210 = arith.addf %208, %209 : vector<8x32xf32>
    %211 = arith.truncf %210 : vector<8x32xf32> to vector<8x32xbf16>
    %212 = vector.extract_strided_slice %196 {offsets = [2, 0, 0], sizes = [1, 32, 32], strides = [1, 1, 1]} : vector<3x32x32xbf16> to vector<1x32x32xbf16>
    %213 = vector.shape_cast %212 : vector<1x32x32xbf16> to vector<32x32xbf16>
    %cst_65 = arith.constant dense<0.000000e+00> : vector<8x32xf32>
    %214 = tpu.matmul %199, %213, %cst_65 {dimension_numbers = #tpu.dot_dimension_numbers<[1], [0], [0], [1], [0, 0, 1, 1], [], []>} : vector<8x32xbf16>, vector<32x32xbf16>, vector<8x32xf32> -> vector<8x32xf32>
    %215 = vector.broadcast %187 : vector<1x32xf32> to vector<8x32xf32>
    %216 = arith.addf %214, %215 : vector<8x32xf32>
    %217 = arith.truncf %216 : vector<8x32xf32> to vector<8x32xbf16>
    %218 = vector.extract_strided_slice %205 {offsets = [0, 0], sizes = [8, 16], strides = [1, 1]} : vector<8x32xbf16> to vector<8x16xbf16>
    %219 = vector.extract_strided_slice %211 {offsets = [0, 0], sizes = [8, 16], strides = [1, 1]} : vector<8x32xbf16> to vector<8x16xbf16>
    %220 = vector.extract_strided_slice %217 {offsets = [0, 0], sizes = [8, 16], strides = [1, 1]} : vector<8x32xbf16> to vector<8x16xbf16>
    %cst_66 = arith.constant dense<0.000000e+00> : vector<8x8xf32>
    %221 = tpu.matmul %218, %219, %cst_66 {dimension_numbers = #tpu.dot_dimension_numbers<[1], [1], [0], [0], [0, 0, 1, 0], [], []>} : vector<8x16xbf16>, vector<8x16xbf16>, vector<8x8xf32> -> vector<8x8xf32>
    %cst_67 = arith.constant 2.500000e-01 : f32
    %222 = vector.broadcast %cst_67 : f32 to vector<8x8xf32>
    %223 = arith.mulf %221, %222 : vector<8x8xf32>
    %224 = vector.broadcast %2 : vector<1x8xf32> to vector<8x8xf32>
    %225 = arith.addf %223, %224 : vector<8x8xf32>
    %cst_68 = arith.constant dense<0xFF800000> : vector<8xf32>
    %226 = vector.multi_reduction <maximumf>, %225, %cst_68 [1] : vector<8x8xf32> to vector<8xf32>
    %227 = vector.shape_cast %226 : vector<8xf32> to vector<8x1xf32>
    %228 = vector.broadcast %227 : vector<8x1xf32> to vector<8x8xf32>
    %229 = arith.subf %225, %228 : vector<8x8xf32>
    %230 = math.exp %229 : vector<8x8xf32>
    %cst_69 = arith.constant dense<0.000000e+00> : vector<8xf32>
    %231 = vector.multi_reduction <add>, %230, %cst_69 [1] : vector<8x8xf32> to vector<8xf32>
    %232 = vector.shape_cast %231 : vector<8xf32> to vector<8x1xf32>
    %233 = tpu.reciprocal %232 {approx = true} : vector<8x1xf32> -> vector<8x1xf32>
    %234 = vector.broadcast %233 : vector<8x1xf32> to vector<8x8xf32>
    %235 = arith.mulf %230, %234 : vector<8x8xf32>
    %236 = arith.truncf %235 : vector<8x8xf32> to vector<8x8xbf16>
    %cst_70 = arith.constant dense<0.000000e+00> : vector<8x16xf32>
    %237 = tpu.matmul %236, %220, %cst_70 {dimension_numbers = #tpu.dot_dimension_numbers<[1], [0], [0], [1], [0, 0, 1, 1], [], []>} : vector<8x8xbf16>, vector<8x16xbf16>, vector<8x16xf32> -> vector<8x16xf32>
    %238 = arith.truncf %237 : vector<8x16xf32> to vector<8x16xbf16>
    %239 = vector.extract_strided_slice %198 {offsets = [0, 0, 0], sizes = [1, 16, 32], strides = [1, 1, 1]} : vector<2x16x32xbf16> to vector<1x16x32xbf16>
    %240 = vector.shape_cast %239 : vector<1x16x32xbf16> to vector<16x32xbf16>
    %cst_71 = arith.constant dense<0.000000e+00> : vector<8x32xf32>
    %241 = tpu.matmul %238, %240, %cst_71 {dimension_numbers = #tpu.dot_dimension_numbers<[1], [0], [0], [1], [0, 0, 1, 1], [], []>} : vector<8x16xbf16>, vector<16x32xbf16>, vector<8x32xf32> -> vector<8x32xf32>
    %242 = vector.extract_strided_slice %205 {offsets = [0, 16], sizes = [8, 16], strides = [1, 1]} : vector<8x32xbf16> to vector<8x16xbf16>
    %243 = vector.extract_strided_slice %211 {offsets = [0, 16], sizes = [8, 16], strides = [1, 1]} : vector<8x32xbf16> to vector<8x16xbf16>
    %244 = vector.extract_strided_slice %217 {offsets = [0, 16], sizes = [8, 16], strides = [1, 1]} : vector<8x32xbf16> to vector<8x16xbf16>
    %cst_72 = arith.constant dense<0.000000e+00> : vector<8x8xf32>
    %245 = tpu.matmul %242, %243, %cst_72 {dimension_numbers = #tpu.dot_dimension_numbers<[1], [1], [0], [0], [0, 0, 1, 0], [], []>} : vector<8x16xbf16>, vector<8x16xbf16>, vector<8x8xf32> -> vector<8x8xf32>
    %cst_73 = arith.constant 2.500000e-01 : f32
    %246 = vector.broadcast %cst_73 : f32 to vector<8x8xf32>
    %247 = arith.mulf %245, %246 : vector<8x8xf32>
    %248 = vector.broadcast %2 : vector<1x8xf32> to vector<8x8xf32>
    %249 = arith.addf %247, %248 : vector<8x8xf32>
    %cst_74 = arith.constant dense<0xFF800000> : vector<8xf32>
    %250 = vector.multi_reduction <maximumf>, %249, %cst_74 [1] : vector<8x8xf32> to vector<8xf32>
    %251 = vector.shape_cast %250 : vector<8xf32> to vector<8x1xf32>
    %252 = vector.broadcast %251 : vector<8x1xf32> to vector<8x8xf32>
    %253 = arith.subf %249, %252 : vector<8x8xf32>
    %254 = math.exp %253 : vector<8x8xf32>
    %cst_75 = arith.constant dense<0.000000e+00> : vector<8xf32>
    %255 = vector.multi_reduction <add>, %254, %cst_75 [1] : vector<8x8xf32> to vector<8xf32>
    %256 = vector.shape_cast %255 : vector<8xf32> to vector<8x1xf32>
    %257 = tpu.reciprocal %256 {approx = true} : vector<8x1xf32> -> vector<8x1xf32>
    %258 = vector.broadcast %257 : vector<8x1xf32> to vector<8x8xf32>
    %259 = arith.mulf %254, %258 : vector<8x8xf32>
    %260 = arith.truncf %259 : vector<8x8xf32> to vector<8x8xbf16>
    %cst_76 = arith.constant dense<0.000000e+00> : vector<8x16xf32>
    %261 = tpu.matmul %260, %244, %cst_76 {dimension_numbers = #tpu.dot_dimension_numbers<[1], [0], [0], [1], [0, 0, 1, 1], [], []>} : vector<8x8xbf16>, vector<8x16xbf16>, vector<8x16xf32> -> vector<8x16xf32>
    %262 = arith.truncf %261 : vector<8x16xf32> to vector<8x16xbf16>
    %263 = vector.extract_strided_slice %198 {offsets = [1, 0, 0], sizes = [1, 16, 32], strides = [1, 1, 1]} : vector<2x16x32xbf16> to vector<1x16x32xbf16>
    %264 = vector.shape_cast %263 : vector<1x16x32xbf16> to vector<16x32xbf16>
    %cst_77 = arith.constant dense<0.000000e+00> : vector<8x32xf32>
    %265 = tpu.matmul %262, %264, %cst_77 {dimension_numbers = #tpu.dot_dimension_numbers<[1], [0], [0], [1], [0, 0, 1, 1], [], []>} : vector<8x16xbf16>, vector<16x32xbf16>, vector<8x32xf32> -> vector<8x32xf32>
    %266 = arith.addf %241, %265 : vector<8x32xf32>
    %267 = vector.broadcast %188 : vector<1x32xf32> to vector<8x32xf32>
    %268 = arith.addf %266, %267 : vector<8x32xf32>
    %269 = arith.addf %268, %184 : vector<8x32xf32>
    %cst_78 = arith.constant dense<0.000000e+00> : vector<8xf32>
    %270 = vector.multi_reduction <add>, %269, %cst_78 [1] : vector<8x32xf32> to vector<8xf32>
    %271 = vector.shape_cast %270 : vector<8xf32> to vector<8x1xf32>
    %cst_79 = arith.constant 3.200000e+01 : f32
    %272 = vector.broadcast %cst_79 : f32 to vector<8x1xf32>
    %273 = arith.divf %271, %272 : vector<8x1xf32>
    %274 = vector.broadcast %273 : vector<8x1xf32> to vector<8x32xf32>
    %275 = arith.subf %269, %274 : vector<8x32xf32>
    %276 = arith.mulf %275, %275 : vector<8x32xf32>
    %cst_80 = arith.constant dense<0.000000e+00> : vector<8xf32>
    %277 = vector.multi_reduction <add>, %276, %cst_80 [1] : vector<8x32xf32> to vector<8xf32>
    %278 = vector.shape_cast %277 : vector<8xf32> to vector<8x1xf32>
    %cst_81 = arith.constant 3.200000e+01 : f32
    %279 = vector.broadcast %cst_81 : f32 to vector<8x1xf32>
    %280 = arith.divf %278, %279 : vector<8x1xf32>
    %281 = vector.broadcast %273 : vector<8x1xf32> to vector<8x32xf32>
    %282 = arith.subf %269, %281 : vector<8x32xf32>
    %cst_82 = arith.constant 9.99999996E-13 : f32
    %283 = vector.broadcast %cst_82 : f32 to vector<8x1xf32>
    %284 = arith.addf %280, %283 : vector<8x1xf32>
    %285 = math.rsqrt %284 : vector<8x1xf32>
    %286 = vector.broadcast %285 : vector<8x1xf32> to vector<8x32xf32>
    %287 = arith.mulf %282, %286 : vector<8x32xf32>
    %288 = vector.broadcast %189 : vector<1x32xf32> to vector<8x32xf32>
    %289 = arith.mulf %287, %288 : vector<8x32xf32>
    %290 = vector.broadcast %190 : vector<1x32xf32> to vector<8x32xf32>
    %291 = arith.addf %289, %290 : vector<8x32xf32>
    %292 = arith.truncf %291 : vector<8x32xf32> to vector<8x32xbf16>
    %c1_83 = arith.constant 1 : index
    %c0_84 = arith.constant 0 : index
    %c0_85 = arith.constant 0 : index
    %293 = vector.load %arg5[%c1_83, %c0_84, %c0_85] : memref<2x32x64xbf16, #tpu.memory_space<vmem>>, vector<1x32x64xbf16>
    %294 = vector.shape_cast %293 : vector<1x32x64xbf16> to vector<32x64xbf16>
    %cst_86 = arith.constant dense<0.000000e+00> : vector<8x64xf32>
    %295 = tpu.matmul %292, %294, %cst_86 {dimension_numbers = #tpu.dot_dimension_numbers<[1], [0], [0], [1], [0, 0, 1, 1], [], []>} : vector<8x32xbf16>, vector<32x64xbf16>, vector<8x64xf32> -> vector<8x64xf32>
    %296 = vector.broadcast %191 : vector<1x64xf32> to vector<8x64xf32>
    %297 = arith.addf %295, %296 : vector<8x64xf32>
    %298 = arith.mulf %297, %297 : vector<8x64xf32>
    %299 = arith.mulf %297, %298 : vector<8x64xf32>
    %cst_87 = arith.constant 4.471500e-02 : f32
    %300 = vector.broadcast %cst_87 : f32 to vector<8x64xf32>
    %301 = arith.mulf %300, %299 : vector<8x64xf32>
    %302 = arith.addf %297, %301 : vector<8x64xf32>
    %cst_88 = arith.constant 0.797884583 : f32
    %303 = vector.broadcast %cst_88 : f32 to vector<8x64xf32>
    %304 = arith.mulf %303, %302 : vector<8x64xf32>
    %305 = math.tanh %304 : vector<8x64xf32>
    %cst_89 = arith.constant 1.000000e+00 : f32
    %306 = vector.broadcast %cst_89 : f32 to vector<8x64xf32>
    %307 = arith.addf %306, %305 : vector<8x64xf32>
    %cst_90 = arith.constant 5.000000e-01 : f32
    %308 = vector.broadcast %cst_90 : f32 to vector<8x64xf32>
    %309 = arith.mulf %308, %307 : vector<8x64xf32>
    %310 = arith.mulf %297, %309 : vector<8x64xf32>
    %311 = arith.truncf %310 : vector<8x64xf32> to vector<8x64xbf16>
    %c1_91 = arith.constant 1 : index
    %c0_92 = arith.constant 0 : index
    %c0_93 = arith.constant 0 : index
    %312 = vector.load %arg6[%c1_91, %c0_92, %c0_93] : memref<2x64x32xbf16, #tpu.memory_space<vmem>>, vector<1x64x32xbf16>
    %313 = vector.shape_cast %312 : vector<1x64x32xbf16> to vector<64x32xbf16>
    %cst_94 = arith.constant dense<0.000000e+00> : vector<8x32xf32>
    %314 = tpu.matmul %311, %313, %cst_94 {dimension_numbers = #tpu.dot_dimension_numbers<[1], [0], [0], [1], [0, 0, 1, 1], [], []>} : vector<8x64xbf16>, vector<64x32xbf16>, vector<8x32xf32> -> vector<8x32xf32>
    %315 = vector.broadcast %192 : vector<1x32xf32> to vector<8x32xf32>
    %316 = arith.addf %314, %315 : vector<8x32xf32>
    %317 = arith.addf %316, %291 : vector<8x32xf32>
    %cst_95 = arith.constant dense<0.000000e+00> : vector<8xf32>
    %318 = vector.multi_reduction <add>, %317, %cst_95 [1] : vector<8x32xf32> to vector<8xf32>
    %319 = vector.shape_cast %318 : vector<8xf32> to vector<8x1xf32>
    %cst_96 = arith.constant 3.200000e+01 : f32
    %320 = vector.broadcast %cst_96 : f32 to vector<8x1xf32>
    %321 = arith.divf %319, %320 : vector<8x1xf32>
    %322 = vector.broadcast %321 : vector<8x1xf32> to vector<8x32xf32>
    %323 = arith.subf %317, %322 : vector<8x32xf32>
    %324 = arith.mulf %323, %323 : vector<8x32xf32>
    %cst_97 = arith.constant dense<0.000000e+00> : vector<8xf32>
    %325 = vector.multi_reduction <add>, %324, %cst_97 [1] : vector<8x32xf32> to vector<8xf32>
    %326 = vector.shape_cast %325 : vector<8xf32> to vector<8x1xf32>
    %cst_98 = arith.constant 3.200000e+01 : f32
    %327 = vector.broadcast %cst_98 : f32 to vector<8x1xf32>
    %328 = arith.divf %326, %327 : vector<8x1xf32>
    %329 = vector.broadcast %321 : vector<8x1xf32> to vector<8x32xf32>
    %330 = arith.subf %317, %329 : vector<8x32xf32>
    %cst_99 = arith.constant 9.99999996E-13 : f32
    %331 = vector.broadcast %cst_99 : f32 to vector<8x1xf32>
    %332 = arith.addf %328, %331 : vector<8x1xf32>
    %333 = math.rsqrt %332 : vector<8x1xf32>
    %334 = vector.broadcast %333 : vector<8x1xf32> to vector<8x32xf32>
    %335 = arith.mulf %330, %334 : vector<8x32xf32>
    %336 = vector.broadcast %193 : vector<1x32xf32> to vector<8x32xf32>
    %337 = arith.mulf %335, %336 : vector<8x32xf32>
    %338 = vector.broadcast %194 : vector<1x32xf32> to vector<8x32xf32>
    %339 = arith.addf %337, %338 : vector<8x32xf32>
    %340 = vector.extract_strided_slice %0 {offsets = [0, 64], sizes = [1, 8], strides = [1, 1]} : vector<9x96xf32> to vector<1x8xf32>
    %341 = arith.truncf %339 : vector<8x32xf32> to vector<8x32xbf16>
    %c0_100 = arith.constant 0 : index
    %c0_101 = arith.constant 0 : index
    %342 = vector.load %arg7[%c0_100, %c0_101] : memref<32x8xbf16, #tpu.memory_space<vmem>>, vector<32x8xbf16>
    %cst_102 = arith.constant dense<0.000000e+00> : vector<8x8xf32>
    %343 = tpu.matmul %341, %342, %cst_102 {dimension_numbers = #tpu.dot_dimension_numbers<[1], [0], [0], [1], [0, 0, 1, 1], [], []>} : vector<8x32xbf16>, vector<32x8xbf16>, vector<8x8xf32> -> vector<8x8xf32>
    %344 = vector.broadcast %340 : vector<1x8xf32> to vector<8x8xf32>
    %345 = arith.addf %343, %344 : vector<8x8xf32>
    %346 = arith.negf %345 : vector<8x8xf32>
    %347 = math.exp %346 : vector<8x8xf32>
    %cst_103 = arith.constant 1.000000e+00 : f32
    %348 = vector.broadcast %cst_103 : f32 to vector<8x8xf32>
    %349 = arith.addf %348, %347 : vector<8x8xf32>
    %350 = arith.divf %348, %349 : vector<8x8xf32>
    %c0_104 = arith.constant 0 : index
    %c0_105 = arith.constant 0 : index
    %c0_106 = arith.constant 0 : index
    %351 = vector.load %arg9[%c0_104, %c0_105, %c0_106] : memref<1x8x8xf32, #tpu.memory_space<vmem>>, vector<1x8x8xf32>
    %352 = vector.shape_cast %351 : vector<1x8x8xf32> to vector<8x8xf32>
    %353 = vector.shape_cast %350 : vector<8x8xf32> to vector<1x8x8xf32>
    tpu.vector_store %arg9[%c0_104, %c0_105, %c0_106], %353 {strides = array<i32>} : memref<1x8x8xf32, #tpu.memory_space<vmem>>, vector<1x8x8xf32>,
    return
  }
  func.func @transform_0(%arg0: i32) -> (i32, i32, i32) {
    %c0_i32 = arith.constant 0 : i32
    %c0_i32_0 = arith.constant 0 : i32
    %c0_i32_1 = arith.constant 0 : i32
    return %arg0, %c0_i32, %c0_i32_0 : i32, i32, i32
  }
  func.func @transform_1(%arg0: i32) -> (i32, i32, i32) {
    %c0_i32 = arith.constant 0 : i32
    %c0_i32_0 = arith.constant 0 : i32
    %c0_i32_1 = arith.constant 0 : i32
    return %arg0, %c0_i32, %c0_i32_0 : i32, i32, i32
  }
  func.func @transform_2(%arg0: i32) -> (i32, i32, i32, i32) {
    %c0_i32 = arith.constant 0 : i32
    %c0_i32_0 = arith.constant 0 : i32
    %c0_i32_1 = arith.constant 0 : i32
    %c0_i32_2 = arith.constant 0 : i32
    %c0_i32_3 = arith.constant 0 : i32
    return %c0_i32, %c0_i32_0, %c0_i32_1, %c0_i32_2 : i32, i32, i32, i32
  }
  func.func @transform_3(%arg0: i32) -> (i32, i32, i32, i32) {
    %c0_i32 = arith.constant 0 : i32
    %c0_i32_0 = arith.constant 0 : i32
    %c0_i32_1 = arith.constant 0 : i32
    %c0_i32_2 = arith.constant 0 : i32
    %c0_i32_3 = arith.constant 0 : i32
    return %c0_i32, %c0_i32_0, %c0_i32_1, %c0_i32_2 : i32, i32, i32, i32
  }
  func.func @transform_4(%arg0: i32) -> (i32, i32, i32) {
    %c0_i32 = arith.constant 0 : i32
    %c0_i32_0 = arith.constant 0 : i32
    %c0_i32_1 = arith.constant 0 : i32
    %c0_i32_2 = arith.constant 0 : i32
    return %c0_i32, %c0_i32_0, %c0_i32_1 : i32, i32, i32
  }
  func.func @transform_5(%arg0: i32) -> (i32, i32, i32) {
    %c0_i32 = arith.constant 0 : i32
    %c0_i32_0 = arith.constant 0 : i32
    %c0_i32_1 = arith.constant 0 : i32
    %c0_i32_2 = arith.constant 0 : i32
    return %c0_i32, %c0_i32_0, %c0_i32_1 : i32, i32, i32
  }
  func.func @transform_6(%arg0: i32) -> (i32, i32) {
    %c0_i32 = arith.constant 0 : i32
    %c0_i32_0 = arith.constant 0 : i32
    %c0_i32_1 = arith.constant 0 : i32
    return %c0_i32, %c0_i32_0 : i32, i32
  }
  func.func @transform_7(%arg0: i32) -> (i32, i32) {
    %c0_i32 = arith.constant 0 : i32
    %c0_i32_0 = arith.constant 0 : i32
    %c0_i32_1 = arith.constant 0 : i32
    return %c0_i32, %c0_i32_0 : i32, i32
  }
  func.func @transform_8(%arg0: i32) -> (i32, i32, i32) {
    %c0_i32 = arith.constant 0 : i32
    %c0_i32_0 = arith.constant 0 : i32
    %c0_i32_1 = arith.constant 0 : i32
    return %arg0, %c0_i32, %c0_i32_0 : i32, i32, i32
  }
}

</mosaic_0001>

<bundles_post_ra>
// kernel: tpu_custom_call.1
= control target key start
LH: loop header
LB: loop body
LE: loop exit
PB: predicated region body
PF: predicated region fallthrough
CT: control target
= control target key end

     0   :  { %s2328_s0 = inlined_call_operand.hbm [shape: bf16[2,8,32], index: 0, kind: input, shape index: {}]   ;;  %s2329_s1 = inlined_call_operand.vmem [shape: f32[2,1,8], index: 1, kind: input, shape index: {}]   ;;  %s2330_s2 = inlined_call_operand.vmem [shape: bf16[2,3,32,32], index: 2, kind: input, shape index: {}]   ;;  %s2331_s3 = inlined_call_operand.hbm [shape: bf16[2,2,16,32], index: 3, kind: input, shape index: {}]   ;;  %s2332_s4 = inlined_call_operand.hbm [shape: bf16[2,32,64], index: 4, kind: input, shape index: {}]   ;;  %s2333_s5 = inlined_call_operand.vmem [shape: bf16[2,64,32], index: 5, kind: input, shape index: {}]   ;;  %s2334_s6 = inlined_call_operand.vmem [shape: bf16[32,8], index: 6, kind: input, shape index: {}]   ;;  %s2335_s7 = inlined_call_operand.vmem [shape: f32[9,96], index: 7, kind: input, shape index: {}]   ;;  %s2336_s8 = inlined_call_operand.hbm [shape: f32[2,8,8], index: 8, kind: output, shape index: {}]  }
   0x1   :  { %2337 = sst [smem:[#allocation13_spill]] %s2331_s3 }
   0x2   :  { %2338 = sst [smem:[#allocation14_spill]] %s2332_s4 }
   0x3   :  { %13 = vsyncpa [#allocation3], 0 }
   0x4   :  { %15 = vsyncpa [#allocation3 + $0x1], 0 }
   0x5   :  { %16 = vsyncpa [#allocation6], 0 }
   0x6   :  { %17 = vsyncpa [#allocation4], 0 }
   0x7   :  { %19 = vsyncpa [#allocation4 + $0x1], 0  ;;  %s1992_s27 = smov 0   ;;  %s1994_s28 = smov 0  }
   0x8   :  { %s1996_s29 = smov 0   ;;  %s1998_s30 = smov 0  }
   0x9 LB: > { %s2339_s3 = sld [smem:[#allocation13_spill]]  ;;  %s2016_s12 = sadd.s32 4294967295, %s1937_s30   ;;  %s1937_s30 = sphi %s1998_s30, %s2353_s30   ;;  %s1933_s29 = sphi %s1996_s29, %s2352_s29   ;;  %s1929_s28 = sphi %s1994_s28, %s2351_s28   ;;  %s1925_s27 = sphi %s1992_s27, %s2350_s27  }
   0xa   : > { %p1457_p0 = scmp.ge.s32.totalorder %s1937_s30, 1  ;;  %p46_p1 = scmp.eq.s32.totalorder %s2016_s12, 0 }
   0xb   : > { %p234_p2 = scmp.lt.s32.totalorder %s1937_s30, 3  ;;  %s1939_s14 = smov [#allocation5]  }
   0xc   : > { %s250_s15 = sshll.u32 %s1939_s14, 4  ;;  %s2341_s4 = sld [smem:[#allocation14_spill]]  ;;  %s251_s15 = int_to_ptr.vmem [resolvable:$true] %s250_s15 }
   0xd   : > { %p2021_p3 = pnand %p1457_p0, %p234_p2  ;;  %s1940_s19 = smov [#allocation7]  }
   0xe   : > { %s264_s20 = sshll.u32 %s1940_s19, 4  ;;  %s1941_s21 = smov 64   ;;  %s265_s20 = int_to_ptr.vmem [resolvable:$true] %s264_s20 }
   0xf   : > { %s248_s11 = sshll.u32 %s2339_s3, 4  ;;  %p1678_p4 = pneg %p2021_p3  ;;  %s249_s11 = int_to_ptr.hbm [resolvable:$true] %s248_s11 }
  0x10   : > { %s1942_s22 = smov 4   ;;  %s1456_s23 = sadd.s32 4294967294, %s1937_s30  }
  0x11   : > { %p1679_p6 = pnand %p1678_p4, %p46_p1  ;;  %s2035_s24 = sadd.s32 1, %s1937_s30  }
  0x12   : > { %s262_s18 = sshll.u32 %s2341_s4, 4  ;;  %s29_s25 = ssub.s32 %s1937_s30, %s2035_s24  ;;  %s263_s18 = int_to_ptr.hbm [resolvable:$true] %s262_s18 }
  0x13   : > { %1681 = dma.hbm_to_vmem [thread:$0]  (!%p1679_p6), %s249_s11, 512, %s251_s15, [#allocation6], %s1941_s21, %s1941_s21, %s1942_s22  }
  0x14   : > { %1684 = dma.hbm_to_vmem [thread:$0]  (!%p1679_p6), %s263_s18, 512, %s265_s20, [#allocation6], %s1941_s21, %s1941_s21, %s1942_s22  }
  0x15   : > { %s32_s26 = sadd.s32 1, %s1933_s29  ;;  %p30_p7 = scmp.eq.s32.totalorder %s29_s25, 0 }
  0x16   : > { %p39_p8 = scmp.ne.s32.totalorder %s1933_s29, %s1929_s28  ;;  %p40_p9 = scmp.eq.s32.totalorder %s1937_s30, 0 }
  0x17   : > { %p45_p10 = scmp.ne.s32.totalorder %s1929_s28, %s1925_s27  ;;  %p221_p13 = scmp.eq.s32.totalorder %s2016_s12, 1 }
  0x18   : > { %s2046_s9 = scalar_select %p30_p7, %s1933_s29, %s32_s26  }
  0x19   : > { %p2048_p11 = por %p40_p9, %p39_p8  ;;  %p2054_p12 = por %p46_p1, %p45_p10 }
  0x1a   : > { %2342 = sst [smem:[#allocation12_spill]] %s2046_s9  ;;  %p227_p0 = scmp.eq.s32.totalorder %s1456_s23, 1 }
  0x1b   : > { %p1695_p2 = scmp.lt.s32.totalorder %s1937_s30, 2  ;;  %s287_s14 = sand.u32 1, %s1933_s29  }
  0x1c   : > { %p2061_p4 = por %p221_p13, %p39_p8  ;;  %p2065_p6 = por %p227_p0, %p45_p10 }
  0x1d   : > { %s1461_s17 = sshll.u32 %s287_s14, 2  ;;  %s1462_s18 = sshll.u32 %s1937_s30, 2 }
  0x1e   : > { %s295_s21 = scalar_lea.hbm %s2328_s0, %s1462_s18  ;;  %s291_s22 = scalar_lea.vmem [#allocation2], %s1461_s17 }
  0x1f   : > { %s299_s25 = sshll.u32 %s291_s22, 4  ;;  %s297_s26 = sshll.u32 %s295_s21, 4  ;;  %s300_s25 = int_to_ptr.vmem [resolvable:$true] %s299_s25  ;;  %s298_s26 = int_to_ptr.hbm [resolvable:$true] %s297_s26 }
  0x20   : > { %p2075_p7 = pnand %p1695_p2, %p2048_p11  ;;  %s288_s3 = scalar_lea.sflag [#allocation3], %s287_s14 }
  0x21   : > { %s1837_s4 = sshra.s32 %s298_s26, 4  ;;  %s1844_s19 = scalar_lea.hbm %s2328_s0, 8  ;;  %s1838_s4 = int_to_ptr.hbm [resolvable:$true] %s1837_s4 }
  0x22   : > { %s1839_s9 = scalar_lea.hbm %s1838_s4, 4  ;;  %p1841_p9 = pneg %p2075_p7 }
  0x23   : > { %p1840_p8 = scmp.ne.s32.totalorder %s1838_s4, %s1839_s9  ;;  %p1845_p11 = scmp.lt.s32.totalorder %s1838_s4, %s2328_s0 }
  0x24   : > { %p1846_p0 = scmp.lt.s32.totalorder %s1844_s19, %s1839_s9 }
  0x25   : > { %p1842_p10 = pnand %p1841_p9, %p1840_p8 }
  0x26   : > { %p1847_p2 = por %p1846_p0, %p1845_p11 }
  0x27   : > { %p1843_p13 = pneg %p1842_p10 }
  0x29   : > { %p1848_p5 = pnand %p1847_p2, %p1843_p13 }
  0x2b   : > { %1851 = shalt.err (!%p1848_p5)
}
  0x2c   : > { %1688 = dma.hbm_to_vmem [thread:$0]  (!%p2075_p7), %s298_s26, 64, %s300_s25, %s288_s3  }
  0x2d   : > { %314 = sbr.rel (%p2021_p3) target bundleno = 3943 (0xf67), region = 52  ;;  %s2092_s14 = sand.u32 (!%p2021_p3), 1, %s1929_s28  }
  0x2e   : > { %s1464_s21 = sshll.u32 (!%p2021_p3), %s2092_s14, 2  ;;  %s317_s22 = scalar_lea.sflag (!%p2021_p3), [#allocation3], %s2092_s14 }
  0x2f   : > { %s320_s17 = scalar_lea.vmem (!%p2021_p3), [#allocation2], %s1464_s21 }
  0x32   : > { %1912 = dma.done.wait (%p2054_p12), %s317_s22, 64  }
  0x33   : > { %1914 = vsyncadd (%p2054_p12), %s317_s22, 4294967232 }
  0x34   : > { %1916 = dma.done.wait (%p46_p1), [#allocation6], 1024  }
  0x35   : > { %1918 = vsyncadd (%p46_p1), [#allocation6], 4294966272  ;;  %v374_v0 = vld [vmem:[%s320_s17] sm:$0xf]  ;;  %vm376_vm0 = vcmask 261120   ;;  %v1943_v3 = vmov 32.0  }
  0x36   : > { %v375_v1 = vunpack.c.l.bf16 %v374_v0  ;;  %1741 = vrcp.f32 %v1943_v3  ;;  %v2108_v4 = vld [vmem:[%s2335_s7] sm:$0xff]  ;;  %s1944_s13 = smov 96   ;;  %v1637_v17 = vld [vmem:[%s2330_s2 + $0x8] sm:$0xff]  ;;  %v1639_v18 = vld [vmem:[%s2330_s2 + $0x18] sm:$0xff]  ;;  %vm519_vm5 = vcmask 130048   ;;  %s1945_s3 = smov 112  }
  0x37   : > { %v2111_v5 = vperm.slane %v2108_v4, 0  ;;  %v1641_v19 = vld [vmem:[%s2330_s2 + $0x28] sm:$0xff]  ;;  %452 = vmatpush.bf16.msra.mxu0 %v1637_v17  ;;  %482 = vmatpush.bf16.msra.mxu1 %v1639_v18  ;;  %v1636_v20 = vld [vmem:[%s2330_s2] sm:$0xff]  ;;  %v1638_v21 = vld [vmem:[%s2330_s2 + $0x10] sm:$0xff]  ;;  %v430_v24 = vperm.slane %v2108_v4, 1  ;;  %p367_p1 = scmp.lt.s32.totalorder %s2016_s12, 1 }
  0x38   : > { %v377_v2 = vsel %vm376_vm0, %v375_v1, 0.0  ;;  %511 = vmatpush.bf16.msra.mxu2 %v1641_v19  ;;  %v1640_v22 = vld [vmem:[%s2330_s2 + $0x20] sm:$0xff]  ;;  %s1946_s26 = smov 64   ;;  %vm560_vm6 = vcmask 1043456   ;;  %vm544_vm7 = vcmask 64512   ;;  %vm804_vm11 = vcmask 523264  }
  0x39   : > { %378 = vadd.xlane.f32.xlu0 %v377_v2  ;;  %409 = vrot.lane.b32.xlu1 %v2111_v5, %s1944_s13  ;;  %s368_s4 = scalar_select %p367_p1, %s2016_s12, 1 }
  0x3a   : > { %s1887_s22 = scalar_lea.hbm %s2336_s8, 16 }
  0x3b   : > { %453 = vmatpush.bf16.msra.mxu0 %v1636_v20  ;;  %483 = vmatpush.bf16.msra.mxu1 %v1638_v21  ;;  %s369_s25 = scalar_lea.vmem %s2329_s1, %s368_s4 }
  0x3c   : > { %v1742_v6 = vpop.eup %1741  ;;  %512 = vmatpush.bf16.msra.mxu2 %v1640_v22  ;;  %v2162_v0 = vld [vmem:[%s369_s25] ss:$0 sm:$0xff] }
  0x3d   : > { %v381_v7 = vmul.f32 32.0, %v1742_v6  ;;  %vm385_vm1 = vweird.f32 %v1742_v6 }
  0x3f   : > { %v382_v8 = vsub.f32 1.0, %v381_v7 }
  0x41   : > { %v383_v9 = vmul.f32 %v1742_v6, %v382_v8  ;;  %473 = vrot.lane.b32.xlu1 %v430_v24, %s1944_s13 }
  0x43   : > { %v384_v10 = vadd.f32 %v1742_v6, %v383_v9 }
  0x45   : > { %v2115_v11 = vsel %vm385_vm1, %v1742_v6, %v384_v10 }
  0xab   : > { %v410_v35 = vpop.permute.xlu1 %409 }
  0xac   : > { %v379_v12 = vpop.xlane.xlu0 %378 }
  0xad   : > { %v387_v13 = vmul.f32 %v2115_v11, %v379_v12 }
  0xaf   : > { %v388_v14 = vsub.f32 %v375_v1, %v387_v13 }
  0xb1   : > { %v389_v15 = vmul.f32 %v388_v14, %v388_v14 }
  0xb3   : > { %v390_v16 = vsel %vm376_vm0, %v389_v15, 0.0  ;;  %v474_v39 = vpop.permute.xlu1 %473 }
  0xb4   : > { %391 = vadd.xlane.f32.xlu0 %v390_v16 }
 0x127   : > { %v392_v23 = vpop.xlane.xlu0 %391 }
 0x128   : > { %v393_v25 = vmul.f32 %v392_v23, %v2115_v11 }
 0x12a   : > { %v394_v26 = vadd.f32 1e-12, %v393_v25 }
 0x12c   : > { %1743 = vrsqrt.f32 %v394_v26  ;;  %vm401_vm3 = vweird.f32 %v394_v26 }
 0x132   : > { %v1744_v27 = vpop.eup %1743 }
 0x133   : > { %v396_v28 = vmul.f32 %v1744_v27, %v394_v26  ;;  %vm402_vm2 = vweird.f32 %v1744_v27  ;;  %v1643_v26 = vld [vmem:[#allocation5 + $0x8] sm:$0xff] }
 0x134   : > { %vm403_vm4 = vmor %vm401_vm3, %vm402_vm2 }
 0x135   : > { %v397_v29 = vmul.f32 %v1744_v27, %v396_v28 }
 0x137   : > { %v398_v30 = vmul.f32 0.5, %v397_v29 }
 0x139   : > { %v399_v31 = vsub.f32 1.5, %v398_v30 }
 0x13b   : > { %v400_v32 = vmul.f32 %v1744_v27, %v399_v31 }
 0x13d   : > { %v404_v33 = vsel %vm403_vm4, %v1744_v27, %v400_v32 }
 0x13e   : > { %v405_v34 = vmul.f32 %v404_v33, %v388_v14 }
 0x140   : > { %v407_v36 = vmul.f32 %v2111_v5, %v405_v34 }
 0x142   : > { %v2141_v37 = vadd.f32 %v410_v35, %v407_v36  ;;  %v1642_v35 = vld [vmem:[#allocation5] sm:$0xff] }
 0x144   : > { %v429_v38 = vpack.c.bf16 %v2141_v37, %v2141_v37 }
 0x146   : > { %1476 = vmatmul.msk.bf16.vlgmr.msra.gmra.mxu0 %vm376_vm0, %v429_v38  ;;  %1485 = vmatmul.msk.bf16.vlgmr.msra.gmra.mxu1 %vm376_vm0, %v429_v38 }
 0x147   : > { %1494 = vmatmul.msk.bf16.vlgmr.msra.gmra.mxu2 %vm376_vm0, %v429_v38 }
 0x1c3   : > { %v455_v40 = vpop.f32.mrf.mxu0  ;;  %v485_v41 = vpop.f32.mrf.mxu1 }
 0x1c4   : > { %v486_v42 = vadd.f32 %v485_v41, %v474_v39  ;;  %v456_v43 = vadd.f32 %v455_v40, %v430_v24 }
 0x1c6   : > { %v489_v44 = vpack.c.bf16 %v486_v42, %v486_v42  ;;  %v459_v47 = vpack.c.bf16 %v456_v43, %v456_v43  ;;  %v690_v43 = vperm.slane %v2108_v4, 2 }
 0x1c8   : > { %v524_v45 = vsel %vm519_vm5, %v489_v44, 0  ;;  %v584_v46 = vunpack.c.l.b16 %v489_v44  ;;  %v579_v52 = vunpack.c.l.b16 %v459_v47 }
 0x1c9   : > { %533 = vmatpush.bf16.xpose.msra.mxu3 %v524_v45 }
 0x1ca   : > { %v514_v48 = vpop.f32.mrf.mxu2  ;;  %v585_v49 = vpack.c.b16 %v584_v46, %v584_v46  ;;  %v580_v53 = vpack.c.b16 %v579_v52, %v579_v52 }
 0x1cb   : > { %v457_v50 = vpop.f32.mrf.mxu0  ;;  %v487_v51 = vpop.f32.mrf.mxu1 }
 0x1cc   : > { %586 = vrot.lane.b32.xlu2 %v585_v49, %s1945_s3 }
 0x1d0   : > { %1495 = vmatmul.msk.bf16.vlgmr.msra.gmra.mxu3 %vm519_vm5, %v459_v47 }
 0x1d1   : > { %662 = vmatpush.bf16.msrb.mxu3 %v1643_v26 }
 0x1d2   : > { %v516_v54 = vpop.f32.mrf.mxu2 }
 0x1d4   : > { %581 = vrot.lane.b32.xlu2 %v580_v53, %s1945_s3 }
 0x1dc   : > { %502 = vrot.lane.b32.xlu2 %v430_v24, %s1946_s26 }
 0x226   : > { %v587_v55 = vpop.permute.xlu2 %586 }
 0x227   : > { %v592_v56 = vsel %vm519_vm5, %v587_v55, 0 }
 0x228   : > { %601 = vmatpush.bf16.xpose.msrb.mxu1 %v592_v56 }
 0x22e   : > { %v582_v57 = vpop.permute.xlu2 %581 }
 0x22f   : > { %1497 = vmatmul.msk.bf16.vlgmr.msrb.gmra.mxu1 %vm519_vm5, %v582_v57  ;;  %v1645_v57 = vld [vmem:[#allocation7 + $0x8] sm:$0xff] }
 0x230   : > { %751 = vmatpush.bf16.msra.mxu1 %v1645_v57 }
 0x236   : > { %v503_v58 = vpop.permute.xlu2 %502 }
 0x237   : > { %v515_v59 = vadd.f32 %v514_v48, %v503_v58  ;;  %v1644_v58 = vld [vmem:[#allocation7] sm:$0xff] }
 0x238   : > { %752 = vmatpush.bf16.msra.mxu1 %v1644_v58 }
 0x239   : > { %v518_v60 = vpack.c.bf16 %v515_v59, %v515_v59 }
 0x23b   : > { %v622_v61 = vunpack.c.l.b16 %v518_v60  ;;  %v562_v62 = vsel %vm560_vm6, %v518_v60, 0 }
 0x23c   : > { %571 = vmatpush.bf16.msrb.mxu0 %v562_v62 }
 0x23d   : > { %v623_v63 = vpack.c.b16 %v622_v61, %v622_v61 }
 0x23f   : > { %624 = vrot.lane.b32.xlu2 %v623_v63, %s1945_s3 }
 0x240   : > { %684 = vmatpush.bf16.msra.mxu0 %v1642_v35 }
 0x253   : > { %v535_v1 = vpop.f32.mrf.mxu3 }
 0x254   : > { %v539_v2 = vmul.f32 0.25, %v535_v1 }
 0x256   : > { %v543_v3 = vadd.f32 %v2162_v0, %v539_v2 }
 0x258   : > { %v545_v6 = vsel %vm544_vm7, %v543_v3, -inf }
 0x259   : > { %546 = vmax.xlane.f32.xlu1 %v545_v6 }
 0x25b   : > { %v537_v7 = vpop.f32.mrf.mxu3 }
 0x272   : > { %720 = vrot.lane.b32.xlu1 %v690_v43, %s1946_s26 }
 0x299   : > { %v625_v8 = vpop.permute.xlu2 %624 }
 0x29a   : > { %v630_v9 = vsel %vm560_vm6, %v625_v8, 0 }
 0x29b   : > { %639 = vmatpush.bf16.msrb.mxu2 %v630_v9 }
 0x2ac   : > { %v603_v10 = vpop.f32.mrf.mxu1 }
 0x2ad   : > { %v607_v12 = vmul.f32 0.25, %v603_v10 }
 0x2af   : > { %v608_v13 = vadd.f32 %v2162_v0, %v607_v12 }
 0x2b1   : > { %v609_v14 = vsel %vm544_vm7, %v608_v13, -inf }
 0x2b2   : > { %610 = vmax.xlane.f32.xlu0 %v609_v14 }
 0x2b4   : > { %v605_v15 = vpop.f32.mrf.mxu1 }
 0x2b5   : > { %v1649_v15 = vld [vmem:[%s2333_s5 + $0x18] sm:$0xff] }
 0x2b6   : > { %812 = vmatpush.bf16.msra.mxu2 %v1649_v15 }
 0x2cc   : > { %v547_v16 = vpop.xlane.xlu1 %546 }
 0x2cd   : > { %v548_v19 = vsub.f32 %v543_v3, %v547_v16  ;;  %v1648_v16 = vld [vmem:[%s2333_s5 + $0x10] sm:$0xff] }
 0x2ce   : > { %813 = vmatpush.bf16.msra.mxu2 %v1648_v16 }
 0x2cf   : > { %v549_v21 = vmul.f32 1.442695, %v548_v19 }
 0x2e4   : > { %v721_v10 = vpop.permute.xlu1 %720 }
 0x325   : > { %v611_v17 = vpop.xlane.xlu0 %610 }
 0x326   : > { %v612_v18 = vsub.f32 %v608_v13, %v611_v17  ;;  %v1647_v17 = vld [vmem:[%s2333_s5 + $0x8] sm:$0xff] }
 0x327   : > { %814 = vmatpush.bf16.msra.mxu2 %v1647_v17 }
 0x328   : > { %v613_v20 = vmul.f32 1.442695, %v612_v18  ;;  %v1646_v18 = vld [vmem:[%s2333_s5] sm:$0xff] }
 0x32a   : > { %1745 = vpow2.f32 %v613_v20 }
 0x32b   : > { %1747 = vpow2.f32 %v549_v21  ;;  %815 = vmatpush.bf16.msra.mxu2 %v1646_v18 }
 0x330   : > { %v1746_v22 = vpop.eup %1745 }
 0x331   : > { %v615_v23 = vsel %vm544_vm7, %v1746_v22, 0.0  ;;  %v1748_v24 = vpop.eup %1747 }
 0x332   : > { %616 = vadd.xlane.f32.xlu0 %v615_v23  ;;  %v551_v25 = vsel %vm544_vm7, %v1748_v24, 0.0 }
 0x33a   : > { %552 = vadd.xlane.f32.xlu0 %v551_v25 }
 0x3a5   : > { %v617_v27 = vpop.xlane.xlu0 %616 }
 0x3a6   : > { %1749 = vrcp.f32 %v617_v27 }
 0x3ac   : > { %v1750_v28 = vpop.eup %1749 }
 0x3ad   : > { %v619_v29 = vmul.f32 %v1750_v28, %v1746_v22  ;;  %v553_v30 = vpop.xlane.xlu0 %552 }
 0x3ae   : > { %1751 = vrcp.f32 %v553_v30 }
 0x3af   : > { %v620_v31 = vpack.c.bf16 %v619_v29, %v619_v29 }
 0x3b1   : > { %1498 = vmatmul.msk.bf16.vlgmr.msrb.gmra.mxu2 %vm544_vm7, %v620_v31 }
 0x3b4   : > { %v1752_v32 = vpop.eup %1751 }
 0x3b5   : > { %v555_v33 = vmul.f32 %v1752_v32, %v1748_v24 }
 0x3b7   : > { %v556_v34 = vpack.c.bf16 %v555_v33, %v555_v33 }
 0x3b9   : > { %1496 = vmatmul.msk.bf16.vlgmr.msrb.gmra.mxu0 %vm544_vm7, %v556_v34 }
 0x434   : > { %v641_v36 = vpop.f32.mrf.mxu2 }
 0x435   : > { %v645_v38 = vpack.c.bf16 %v641_v36, %v641_v36 }
 0x436   : > { %v573_v39 = vpop.f32.mrf.mxu0 }
 0x437   : > { %v577_v40 = vpack.c.bf16 %v573_v39, %v573_v39  ;;  %1503 = vmatmul.msk.bf16.vlgmr.msrb.gmra.mxu3 %vm519_vm5, %v645_v38  ;;  %v844_v39 = vperm.slane %v2108_v4, 4 }
 0x439   : > { %1508 = vmatmul.msk.bf16.vlgmr.msra.gmra.mxu0 %vm519_vm5, %v577_v40 }
 0x43c   : > { %v643_v41 = vpop.f32.mrf.mxu2 }
 0x43e   : > { %v575_v42 = vpop.f32.mrf.mxu0 }
 0x4b6   : > { %v686_v44 = vpop.f32.mrf.mxu0 }
 0x4ba   : > { %v664_v45 = vpop.f32.mrf.mxu3 }
 0x4bb   : > { %v687_v46 = vadd.f32 %v686_v44, %v664_v45  ;;  %v1651_v45 = vld [vmem:[%s2330_s2 + $0x38] sm:$0xff] }
 0x4bc   : > { %892 = vmatpush.bf16.msra.mxu3 %v1651_v45 }
 0x4bd   : > { %v691_v47 = vadd.f32 %v690_v43, %v687_v46  ;;  %v1653_v46 = vld [vmem:[%s2330_s2 + $0x48] sm:$0xff] }
 0x4be   : > { %v688_v48 = vpop.f32.mrf.mxu0  ;;  %922 = vmatpush.bf16.msrb.mxu0 %v1653_v46 }
 0x4bf   : > { %v692_v49 = vadd.f32 %v691_v47, %v2141_v37  ;;  %v729_v37 = vperm.slane %v2108_v4, 3  ;;  %v1655_v47 = vld [vmem:[%s2330_s2 + $0x58] sm:$0xff]  ;;  %v1650_v48 = vld [vmem:[%s2330_s2 + $0x30] sm:$0xff] }
 0x4c0   : > { %951 = vmatpush.bf16.msrb.mxu1 %v1655_v47  ;;  %893 = vmatpush.bf16.msra.mxu3 %v1650_v48 }
 0x4c1   : > { %v693_v50 = vsel %vm376_vm0, %v692_v49, 0.0 }
 0x4c2   : > { %694 = vadd.xlane.f32.xlu2 %v693_v50  ;;  %v666_v51 = vpop.f32.mrf.mxu3  ;;  %v1654_v50 = vld [vmem:[%s2330_s2 + $0x50] sm:$0xff] }
 0x4c4   : > { %952 = vmatpush.bf16.msrb.mxu1 %v1654_v50 }
 0x535   : > { %v695_v52 = vpop.xlane.xlu2 %694 }
 0x536   : > { %v696_v53 = vmul.f32 %v695_v52, %v2115_v11  ;;  %v870_v52 = vperm.slane %v2108_v4, 5 }
 0x538   : > { %v697_v54 = vsub.f32 %v692_v49, %v696_v53  ;;  %v1652_v49 = vld [vmem:[%s2330_s2 + $0x40] sm:$0xff]  ;;  %913 = vrot.lane.b32.xlu1 %v870_v52, %s1944_s13 }
 0x539   : > { %923 = vmatpush.bf16.msrb.mxu0 %v1652_v49 }
 0x53a   : > { %v698_v55 = vmul.f32 %v697_v54, %v697_v54 }
 0x53c   : > { %v699_v56 = vsel %vm376_vm0, %v698_v55, 0.0 }
 0x53d   : > { %700 = vadd.xlane.f32.xlu0 %v699_v56 }
 0x551   : > { %716 = vrot.lane.b32.xlu0 %v690_v43, %s1944_s13 }
 0x559   : > { %801 = vrot.lane.b32.xlu0 %v729_v37, %s1946_s26 }
 0x5b0   : > { %v701_v59 = vpop.xlane.xlu0 %700 }
 0x5b1   : > { %v702_v60 = vmul.f32 %v701_v59, %v2115_v11 }
 0x5b3   : > { %v703_v61 = vadd.f32 1e-12, %v702_v60 }
 0x5b5   : > { %1753 = vrsqrt.f32 %v703_v61  ;;  %vm710_vm9 = vweird.f32 %v703_v61 }
 0x5bb   : > { %v1754_v62 = vpop.eup %1753 }
 0x5bc   : > { %v705_v63 = vmul.f32 %v1754_v62, %v703_v61  ;;  %vm711_vm8 = vweird.f32 %v1754_v62 }
 0x5bd   : > { %vm712_vm10 = vmor %vm710_vm9, %vm711_vm8 }
 0x5be   : > { %v706_v1 = vmul.f32 %v1754_v62, %v705_v63 }
 0x5c0   : > { %v707_v2 = vmul.f32 0.5, %v706_v1 }
 0x5c2   : > { %v708_v3 = vsub.f32 1.5, %v707_v2 }
 0x5c3   : > { %v717_v8 = vpop.permute.xlu0 %716 }
 0x5c4   : > { %v709_v6 = vmul.f32 %v1754_v62, %v708_v3  ;;  %v914_v3 = vpop.permute.xlu1 %913 }
 0x5c6   : > { %v713_v7 = vsel %vm712_vm10, %v1754_v62, %v709_v6 }
 0x5c7   : > { %v714_v9 = vmul.f32 %v713_v7, %v697_v54 }
 0x5c9   : > { %v719_v12 = vmul.f32 %v717_v8, %v714_v9 }
 0x5cb   : > { %v723_v13 = vadd.f32 %v721_v10, %v719_v12  ;;  %v802_v32 = vpop.permute.xlu0 %801 }
 0x5cd   : > { %v724_v14 = vpack.c.bf16 %v723_v13, %v723_v13 }
 0x5cf   : > { %1517 = vmatmul.msk.bf16.vlgmr.msra.gmra.mxu1 %vm376_vm0, %v724_v14 }
 0x64c   : > { %v754_v19 = vpop.f32.mrf.mxu1 }
 0x64d   : > { %v755_v20 = vadd.f32 %v754_v19, %v729_v37 }
 0x64f   : > { %v758_v21 = vmul.f32 %v755_v20, %v755_v20 }
 0x651   : > { %v759_v22 = vmul.f32 %v758_v21, %v755_v20 }
 0x653   : > { %v760_v23 = vmul.f32 0.044715, %v759_v22 }
 0x654   : > { %v756_v24 = vpop.f32.mrf.mxu1 }
 0x655   : > { %v761_v25 = vadd.f32 %v760_v23, %v755_v20 }
 0x657   : > { %v762_v26 = vmul.f32 0.7978846, %v761_v25 }
 0x659   : > { %1755 = vtanh.f32 %v762_v26 }
 0x65f   : > { %v1756_v27 = vpop.eup %1755 }
 0x660   : > { %v764_v28 = vadd.f32 1.0, %v1756_v27 }
 0x662   : > { %v765_v29 = vmul.f32 0.5, %v764_v28 }
 0x664   : > { %v766_v30 = vmul.f32 %v765_v29, %v755_v20 }
 0x666   : > { %v767_v31 = vpack.c.bf16 %v766_v30, %v766_v30 }
 0x668   : > { %1534 = vmatmul.msk.bf16.vlgmr.msra.gmra.mxu2 %vm804_vm11, %v767_v31 }
 0x6eb   : > { %v817_v33 = vpop.f32.mrf.mxu2 }
 0x6ec   : > { %v818_v34 = vadd.f32 %v817_v33, %v802_v32 }
 0x6ee   : > { %v821_v35 = vadd.f32 %v818_v34, %v723_v13 }
 0x6f0   : > { %v822_v36 = vsel %vm376_vm0, %v821_v35, 0.0 }
 0x6f1   : > { %823 = vadd.xlane.f32.xlu2 %v822_v36 }
 0x6f3   : > { %v819_v38 = vpop.f32.mrf.mxu2 }
 0x709   : > { %847 = vrot.lane.b32.xlu2 %v844_v39, %s1944_s13 }
 0x764   : > { %v824_v40 = vpop.xlane.xlu2 %823 }
 0x765   : > { %v825_v41 = vmul.f32 %v824_v40, %v2115_v11 }
 0x767   : > { %v826_v42 = vsub.f32 %v821_v35, %v825_v41 }
 0x769   : > { %v827_v43 = vmul.f32 %v826_v42, %v826_v42 }
 0x76b   : > { %v828_v44 = vsel %vm376_vm0, %v827_v43, 0.0 }
 0x76c   : > { %829 = vadd.xlane.f32.xlu0 %v828_v44  ;;  %v848_v62 = vpop.permute.xlu2 %847 }
 0x780   : > { %942 = vrot.lane.b32.xlu0 %v870_v52, %s1946_s26 }
 0x7df   : > { %v830_v51 = vpop.xlane.xlu0 %829 }
 0x7e0   : > { %v831_v53 = vmul.f32 %v830_v51, %v2115_v11 }
 0x7e2   : > { %v832_v54 = vadd.f32 1e-12, %v831_v53 }
 0x7e4   : > { %1757 = vrsqrt.f32 %v832_v54  ;;  %vm839_vm13 = vweird.f32 %v832_v54 }
 0x7ea   : > { %v1758_v55 = vpop.eup %1757 }
 0x7eb   : > { %v834_v56 = vmul.f32 %v1758_v55, %v832_v54  ;;  %vm840_vm12 = vweird.f32 %v1758_v55 }
 0x7ec   : > { %vm841_vm14 = vmor %vm839_vm13, %vm840_vm12 }
 0x7ed   : > { %v835_v57 = vmul.f32 %v1758_v55, %v834_v56 }
 0x7ef   : > { %v836_v58 = vmul.f32 0.5, %v835_v57  ;;  %v1656_v57 = vld [vmem:[#allocation5 + $0x10] sm:$0xff] }
 0x7f1   : > { %v837_v37 = vsub.f32 1.5, %v836_v58 }
 0x7f2   : > { %v943_v6 = vpop.permute.xlu0 %942 }
 0x7f3   : > { %v838_v59 = vmul.f32 %v1758_v55, %v837_v37  ;;  %v1657_v37 = vld [vmem:[#allocation5 + $0x18] sm:$0xff] }
 0x7f5   : > { %v842_v60 = vsel %vm841_vm14, %v1758_v55, %v838_v59 }
 0x7f6   : > { %v843_v61 = vmul.f32 %v842_v60, %v826_v42 }
 0x7f8   : > { %v845_v63 = vmul.f32 %v844_v39, %v843_v61 }
 0x7fa   : > { %v2226_v1 = vadd.f32 %v848_v62, %v845_v63 }
 0x7fc   : > { %v869_v2 = vpack.c.bf16 %v2226_v1, %v2226_v1 }
 0x7fe   : > { %1555 = vmatmul.msk.bf16.vlgmr.msra.gmra.mxu3 %vm376_vm0, %v869_v2  ;;  %1564 = vmatmul.msk.bf16.vlgmr.msrb.gmra.mxu0 %vm376_vm0, %v869_v2 }
 0x7ff   : > { %1573 = vmatmul.msk.bf16.vlgmr.msrb.gmra.mxu1 %vm376_vm0, %v869_v2 }
 0x87b   : > { %v925_v7 = vpop.f32.mrf.mxu0 }
 0x87c   : > { %v926_v8 = vadd.f32 %v925_v7, %v914_v3  ;;  %v954_v9 = vpop.f32.mrf.mxu1 }
 0x87d   : > { %v955_v10 = vadd.f32 %v954_v9, %v943_v6 }
 0x87e   : > { %v929_v12 = vpack.c.bf16 %v926_v8, %v926_v8 }
 0x87f   : > { %v958_v13 = vpack.c.bf16 %v955_v10, %v955_v10  ;;  %v1124_v10 = vperm.slane %v2108_v4, 6 }
 0x880   : > { %v963_v14 = vsel %vm519_vm5, %v929_v12, 0  ;;  %v1018_v15 = vunpack.c.l.b16 %v929_v12 }
 0x881   : > { %v996_v16 = vsel %vm560_vm6, %v958_v13, 0  ;;  %v895_v17 = vpop.f32.mrf.mxu3  ;;  %972 = vmatpush.bf16.xpose.msrb.mxu2 %v963_v14  ;;  %v1056_v45 = vunpack.c.l.b16 %v958_v13 }
 0x882   : > { %v1019_v18 = vpack.c.b16 %v1018_v15, %v1018_v15  ;;  %v896_v19 = vadd.f32 %v895_v17, %v870_v52  ;;  %1005 = vmatpush.bf16.msrb.mxu3 %v996_v16 }
 0x883   : > { %v927_v20 = vpop.f32.mrf.mxu0  ;;  %v1057_v46 = vpack.c.b16 %v1056_v45, %v1056_v45 }
 0x884   : > { %v899_v21 = vpack.c.bf16 %v896_v19, %v896_v19  ;;  %v956_v22 = vpop.f32.mrf.mxu1  ;;  %1020 = vrot.lane.b32.xlu1 %v1019_v18, %s1945_s3 }
 0x886   : > { %v1013_v23 = vunpack.c.l.b16 %v899_v21  ;;  %1118 = vmatpush.bf16.msra.mxu3 %v1656_v57 }
 0x888   : > { %1574 = vmatmul.msk.bf16.vlgmr.msrb.gmra.mxu2 %vm519_vm5, %v899_v21  ;;  %v1014_v25 = vpack.c.b16 %v1013_v23, %v1013_v23  ;;  %v1659_v23 = vld [vmem:[#allocation7 + $0x18] sm:$0xff] }
 0x889   : > { %v897_v24 = vpop.f32.mrf.mxu3  ;;  %1096 = vmatpush.bf16.msra.mxu2 %v1657_v37 }
 0x88a   : > { %v1658_v24 = vld [vmem:[#allocation7 + $0x10] sm:$0xff] }
 0x88c   : > { %1015 = vrot.lane.b32.xlu1 %v1014_v25, %s1945_s3 }
 0x8f6   : > { %v1021_v26 = vpop.permute.xlu1 %1020 }
 0x8f7   : > { %v1026_v27 = vsel %vm519_vm5, %v1021_v26, 0 }
 0x8f8   : > { %1035 = vmatpush.bf16.xpose.msra.mxu0 %v1026_v27 }
 0x8fe   : > { %v1016_v28 = vpop.permute.xlu1 %1015 }
 0x8ff   : > { %1576 = vmatmul.msk.bf16.vlgmr.msra.gmra.mxu0 %vm519_vm5, %v1016_v28 }
 0x900   : > { %1186 = vmatpush.bf16.msrb.mxu0 %v1659_v23 }
 0x904   : > { %1187 = vmatpush.bf16.msrb.mxu0 %v1658_v24 }
 0x90b   : > { %v974_v29 = vpop.f32.mrf.mxu2 }
 0x90c   : > { %v978_v30 = vmul.f32 0.25, %v974_v29 }
 0x90e   : > { %v979_v31 = vadd.f32 %v2162_v0, %v978_v30 }
 0x910   : > { %v980_v32 = vsel %vm544_vm7, %v979_v31, -inf }
 0x911   : > { %981 = vmax.xlane.f32.xlu2 %v980_v32 }
 0x913   : > { %v976_v33 = vpop.f32.mrf.mxu2 }
 0x97c   : > { %v1037_v34 = vpop.f32.mrf.mxu0 }
 0x97d   : > { %v1041_v35 = vmul.f32 0.25, %v1037_v34 }
 0x97f   : > { %v1042_v36 = vadd.f32 %v2162_v0, %v1041_v35 }
 0x981   : > { %v1043_v38 = vsel %vm544_vm7, %v1042_v36, -inf }
 0x982   : > { %1044 = vmax.xlane.f32.xlu1 %v1043_v38 }
 0x984   : > { %v1039_v39 = vpop.f32.mrf.mxu0  ;;  %v982_v40 = vpop.xlane.xlu2 %981 }
 0x985   : > { %v983_v41 = vsub.f32 %v979_v31, %v982_v40 }
 0x987   : > { %v984_v42 = vmul.f32 1.442695, %v983_v41  ;;  %v1663_v41 = vld [vmem:[%s2333_s5 + $0x38] sm:$0xff] }
 0x989   : > { %1759 = vpow2.f32 %v984_v42  ;;  %v1662_v42 = vld [vmem:[%s2333_s5 + $0x30] sm:$0xff] }
 0x98f   : > { %v1760_v43 = vpop.eup %1759 }
 0x990   : > { %v986_v44 = vsel %vm544_vm7, %v1760_v43, 0.0 }
 0x991   : > { %987 = vadd.xlane.f32.xlu0 %v986_v44  ;;  %v1660_v44 = vld [vmem:[%s2333_s5 + $0x20] sm:$0xff] }
 0x99b   : > { %1058 = vrot.lane.b32.xlu1 %v1057_v46, %s1945_s3 }
 0x9a3   : > { %1154 = vrot.lane.b32.xlu1 %v1124_v10, %s1946_s26 }
 0x9f5   : > { %v1045_v47 = vpop.xlane.xlu1 %1044 }
 0x9f6   : > { %v1046_v48 = vsub.f32 %v1042_v36, %v1045_v47 }
 0x9f8   : > { %v1047_v49 = vmul.f32 1.442695, %v1046_v48 }
 0x9fa   : > { %1761 = vpow2.f32 %v1047_v49 }
 0xa00   : > { %v1762_v0 = vpop.eup %1761 }
 0xa01   : > { %v1049_v50 = vsel %vm544_vm7, %v1762_v0, 0.0 }
 0xa02   : > { %1050 = vadd.xlane.f32.xlu2 %v1049_v50 }
 0xa04   : > { %v988_v51 = vpop.xlane.xlu0 %987 }
 0xa05   : > { %1763 = vrcp.f32 %v988_v51 }
 0xa0b   : > { %v1764_v52 = vpop.eup %1763 }
 0xa0c   : > { %v990_v53 = vmul.f32 %v1764_v52, %v1760_v43  ;;  %v1661_v43 = vld [vmem:[%s2333_s5 + $0x28] sm:$0xff] }
 0xa0d   : > { %v1059_v54 = vpop.permute.xlu1 %1058 }
 0xa0e   : > { %v991_v55 = vpack.c.bf16 %v990_v53, %v990_v53  ;;  %v1064_v56 = vsel %vm560_vm6, %v1059_v54, 0 }
 0xa0f   : > { %1073 = vmatpush.bf16.msra.mxu1 %v1064_v56 }
 0xa10   : > { %1575 = vmatmul.msk.bf16.vlgmr.msrb.gmra.mxu3 %vm544_vm7, %v991_v55 }
 0xa13   : > { %1247 = vmatpush.bf16.msrb.mxu1 %v1663_v41 }
 0xa17   : > { %1248 = vmatpush.bf16.msrb.mxu1 %v1662_v42 }
 0xa1b   : > { %1249 = vmatpush.bf16.msrb.mxu1 %v1661_v43 }
 0xa1f   : > { %1250 = vmatpush.bf16.msrb.mxu1 %v1660_v44 }
 0xa75   : > { %v1051_v58 = vpop.xlane.xlu2 %1050 }
 0xa76   : > { %1765 = vrcp.f32 %v1051_v58 }
 0xa7c   : > { %v1766_v59 = vpop.eup %1765 }
 0xa7d   : > { %v1053_v60 = vmul.f32 %v1766_v59, %v1762_v0 }
 0xa7f   : > { %v1054_v61 = vpack.c.bf16 %v1053_v60, %v1053_v60 }
 0xa81   : > { %1577 = vmatmul.msk.bf16.vlgmr.msra.gmra.mxu1 %vm544_vm7, %v1054_v61 }
 0xa93   : > { %v1007_v62 = vpop.f32.mrf.mxu3 }
 0xa94   : > { %v1011_v63 = vpack.c.bf16 %v1007_v62, %v1007_v62  ;;  %v1740_v62 = vld [vmem:[%s2335_s7 + $0x8] ss:$0 sm:$0xff] }
 0xa96   : > { %1587 = vmatmul.msk.bf16.vlgmr.msra.gmra.mxu3 %vm519_vm5, %v1011_v63 }
 0xa9b   : > { %v1009_v2 = vpop.f32.mrf.mxu3 }
 0xafe   : > { %v1075_v3 = vpop.f32.mrf.mxu1 }
 0xaff   : > { %v1079_v6 = vpack.c.bf16 %v1075_v3, %v1075_v3 }
 0xb01   : > { %1582 = vmatmul.msk.bf16.vlgmr.msra.gmra.mxu2 %vm519_vm5, %v1079_v6 }
 0xb06   : > { %v1077_v7 = vpop.f32.mrf.mxu1 }
 0xb19   : > { %v1120_v8 = vpop.f32.mrf.mxu3 }
 0xb21   : > { %v1122_v9 = vpop.f32.mrf.mxu3 }
 0xb22   : > { %v1664_v9 = vld [vmem:[%s2334_s6] sm:$0xff] }
 0xb84   : > { %v1098_v12 = vpop.f32.mrf.mxu2 }
 0xb85   : > { %v1121_v13 = vadd.f32 %v1120_v8, %v1098_v12  ;;  %v1665_v8 = vld [vmem:[%s2334_s6 + $0x8] sm:$0xff] }
 0xb86   : > { %1315 = vmatpush.bf16.msrb.mxu2 %v1665_v8 }
 0xb87   : > { %v1125_v14 = vadd.f32 %v1124_v10, %v1121_v13 }
 0xb89   : > { %v1126_v15 = vadd.f32 %v1125_v14, %v2226_v1  ;;  %v1164_v1 = vperm.slane %v2108_v4, 7  ;;  %v1155_v4 = vpop.permute.xlu1 %1154 }
 0xb8a   : > { %1316 = vmatpush.bf16.msrb.mxu2 %v1664_v9 }
 0xb8b   : > { %v1127_v16 = vsel %vm376_vm0, %v1126_v15, 0.0  ;;  %1237 = vrot.lane.b32.xlu0 %v1164_v1, %s1946_s26 }
 0xb8c   : > { %1128 = vadd.xlane.f32.xlu2 %v1127_v16  ;;  %v1100_v17 = vpop.f32.mrf.mxu2 }
 0xb93   : > { %1282 = vrot.lane.b32.xlu0 %v1740_v62, %s1944_s13 }
 0xb9b   : > { %1303 = vrot.lane.b32.xlu0 %v2111_v5, %s1946_s26  ;;  %s1633_s26 = sshll.u32 %s2016_s12, 3  ;;  %s1343_s12 = scalar_lea.sflag [#allocation4], %s2092_s14 }
 0xb9c   : > { %s1353_s11 = scalar_lea.hbm %s2336_s8, %s1633_s26 }
 0xb9d   : > { %s1357_s18 = sshll.u32 %s1353_s11, 4  ;;  %s1358_s18 = int_to_ptr.hbm [resolvable:$true] %s1357_s18 }
 0xb9e   : > { %s1881_s19 = sshra.s32 %s1358_s18, 4  ;;  %s1882_s19 = int_to_ptr.hbm [resolvable:$true] %s1881_s19 }
 0xb9f   : > { %s1883_s20 = scalar_lea.hbm %s1882_s19, 8  ;;  %p1888_p7 = scmp.lt.s32.totalorder %s1882_s19, %s2336_s8 }
 0xba0   : > { %p1884_p3 = scmp.ne.s32.totalorder %s1882_s19, %s1883_s20  ;;  %p1889_p8 = scmp.lt.s32.totalorder %s1887_s22, %s1883_s20 }
 0xba2   : > { %p1885_p5 = pnand %p1884_p3, %p2061_p4  ;;  %p1890_p9 = por %p1889_p8, %p1888_p7 }
 0xba4   : > { %p1886_p12 = pneg %p1885_p5 }
 0xba6   : > { %p1891_p10 = pnand %p1890_p9, %p1886_p12 }
 0xbfd   : > { %v1238_v57 = vpop.permute.xlu0 %1237 }
 0xbff   : > { %v1129_v18 = vpop.xlane.xlu2 %1128 }
 0xc00   : > { %v1130_v19 = vmul.f32 %v1129_v18, %v2115_v11 }
 0xc02   : > { %v1131_v20 = vsub.f32 %v1126_v15, %v1130_v19 }
 0xc04   : > { %v1132_v21 = vmul.f32 %v1131_v20, %v1131_v20 }
 0xc06   : > { %v1133_v22 = vsel %vm376_vm0, %v1132_v21, 0.0  ;;  %v1283_v21 = vpop.permute.xlu0 %1282 }
 0xc07   : > { %1134 = vadd.xlane.f32.xlu2 %v1133_v22 }
 0xc1f   : > { %1150 = vrot.lane.b32.xlu2 %v1124_v10, %s1944_s13  ;;  %s1467_s13 = sshll.u32 %s2092_s14, 3 }
 0xc20   : > { %s366_s25 = scalar_lea.vmem [#allocation8], %s1467_s13 }
 0xc21   : > { %s1355_s23 = sshll.u32 %s366_s25, 4  ;;  %s1356_s23 = int_to_ptr.vmem [resolvable:$true] %s1355_s23 }
 0xc7a   : > { %v1135_v25 = vpop.xlane.xlu2 %1134 }
 0xc7b   : > { %v1136_v26 = vmul.f32 %v1135_v25, %v2115_v11 }
 0xc7d   : > { %v1137_v27 = vadd.f32 1e-12, %v1136_v26 }
 0xc7f   : > { %1767 = vrsqrt.f32 %v1137_v27  ;;  %vm1144_vm1 = vweird.f32 %v1137_v27 }
 0xc82   : > { %v1151_v35 = vpop.permute.xlu2 %1150 }
 0xc85   : > { %v1768_v28 = vpop.eup %1767 }
 0xc86   : > { %v1139_v29 = vmul.f32 %v1768_v28, %v1137_v27  ;;  %vm1145_vm15 = vweird.f32 %v1768_v28 }
 0xc87   : > { %vm1146_vm2 = vmor %vm1144_vm1, %vm1145_vm15 }
 0xc88   : > { %v1140_v30 = vmul.f32 %v1768_v28, %v1139_v29 }
 0xc8a   : > { %v1141_v31 = vmul.f32 0.5, %v1140_v30 }
 0xc8c   : > { %v1142_v32 = vsub.f32 1.5, %v1141_v31 }
 0xc8e   : > { %v1143_v33 = vmul.f32 %v1768_v28, %v1142_v32 }
 0xc90   : > { %v1147_v34 = vsel %vm1146_vm2, %v1768_v28, %v1143_v33 }
 0xc91   : > { %v1148_v36 = vmul.f32 %v1147_v34, %v1131_v20 }
 0xc93   : > { %v1153_v38 = vmul.f32 %v1151_v35, %v1148_v36 }
 0xc95   : > { %v1157_v39 = vadd.f32 %v1155_v4, %v1153_v38 }
 0xc97   : > { %v1158_v40 = vpack.c.bf16 %v1157_v39, %v1157_v39 }
 0xc99   : > { %1596 = vmatmul.msk.bf16.vlgmr.msrb.gmra.mxu0 %vm376_vm0, %v1158_v40 }
 0xd16   : > { %v1189_v45 = vpop.f32.mrf.mxu0 }
 0xd17   : > { %v1190_v46 = vadd.f32 %v1189_v45, %v1164_v1 }
 0xd19   : > { %v1193_v47 = vmul.f32 %v1190_v46, %v1190_v46 }
 0xd1b   : > { %v1194_v48 = vmul.f32 %v1193_v47, %v1190_v46 }
 0xd1d   : > { %v1195_v49 = vmul.f32 0.044715, %v1194_v48 }
 0xd1e   : > { %v1191_v0 = vpop.f32.mrf.mxu0 }
 0xd1f   : > { %v1196_v50 = vadd.f32 %v1195_v49, %v1190_v46 }
 0xd21   : > { %v1197_v51 = vmul.f32 0.7978846, %v1196_v50 }
 0xd23   : > { %1769 = vtanh.f32 %v1197_v51 }
 0xd29   : > { %v1770_v52 = vpop.eup %1769 }
 0xd2a   : > { %v1199_v53 = vadd.f32 1.0, %v1770_v52 }
 0xd2c   : > { %v1200_v54 = vmul.f32 0.5, %v1199_v53 }
 0xd2e   : > { %v1201_v55 = vmul.f32 %v1200_v54, %v1190_v46 }
 0xd30   : > { %v1202_v56 = vpack.c.bf16 %v1201_v55, %v1201_v55 }
 0xd32   : > { %1621 = vmatmul.msk.bf16.vlgmr.msrb.gmra.mxu1 %vm804_vm11, %v1202_v56 }
 0xdaf   : > { %v1252_v58 = vpop.f32.mrf.mxu1 }
 0xdb0   : > { %v1253_v37 = vadd.f32 %v1252_v58, %v1238_v57 }
 0xdb2   : > { %v1256_v59 = vadd.f32 %v1253_v37, %v1157_v39 }
 0xdb4   : > { %v1257_v60 = vsel %vm376_vm0, %v1256_v59, 0.0 }
 0xdb5   : > { %1258 = vadd.xlane.f32.xlu1 %v1257_v60 }
 0xdb7   : > { %v1254_v61 = vpop.f32.mrf.mxu1 }
 0xe28   : > { %v1259_v63 = vpop.xlane.xlu1 %1258 }
 0xe29   : > { %v1260_v2 = vmul.f32 %v1259_v63, %v2115_v11 }
 0xe2b   : > { %v1261_v3 = vsub.f32 %v1256_v59, %v1260_v2 }
 0xe2d   : > { %v1262_v6 = vmul.f32 %v1261_v3, %v1261_v3 }
 0xe2f   : > { %v1263_v7 = vsel %vm376_vm0, %v1262_v6, 0.0 }
 0xe30   : > { %1264 = vadd.xlane.f32.xlu2 %v1263_v7 }
 0xea3   : > { %v1265_v10 = vpop.xlane.xlu2 %1264 }
 0xea4   : > { %v1266_v5 = vmul.f32 %v1265_v10, %v2115_v11  ;;  %v1304_v11 = vpop.permute.xlu0 %1303 }
 0xea6   : > { %v1267_v12 = vadd.f32 1e-12, %v1266_v5 }
 0xea8   : > { %1771 = vrsqrt.f32 %v1267_v12  ;;  %vm1274_vm4 = vweird.f32 %v1267_v12 }
 0xeae   : > { %v1772_v13 = vpop.eup %1771 }
 0xeaf   : > { %v1269_v14 = vmul.f32 %v1772_v13, %v1267_v12  ;;  %vm1275_vm3 = vweird.f32 %v1772_v13 }
 0xeb0   : > { %vm1276_vm5 = vmor %vm1274_vm4, %vm1275_vm3 }
 0xeb1   : > { %v1270_v15 = vmul.f32 %v1772_v13, %v1269_v14 }
 0xeb3   : > { %v1271_v16 = vmul.f32 0.5, %v1270_v15 }
 0xeb5   : > { %v1272_v17 = vsub.f32 1.5, %v1271_v16 }
 0xeb7   : > { %v1273_v18 = vmul.f32 %v1772_v13, %v1272_v17 }
 0xeb9   : > { %v1277_v19 = vsel %vm1276_vm5, %v1772_v13, %v1273_v18 }
 0xeba   : > { %v1278_v20 = vmul.f32 %v1277_v19, %v1261_v3 }
 0xebc   : > { %v1280_v22 = vmul.f32 %v1740_v62, %v1278_v20 }
 0xebe   : > { %v1285_v23 = vadd.f32 %v1283_v21, %v1280_v22 }
 0xec0   : > { %v1286_v24 = vpack.c.bf16 %v1285_v23, %v1285_v23 }
 0xec2   : > { %1630 = vmatmul.msk.bf16.vlgmr.msrb.gmra.mxu2 %vm376_vm0, %v1286_v24 }
 0xf45   : > { %v1318_v1 = vpop.f32.mrf.mxu2 }
 0xf46   : > { %v1319_v25 = vadd.f32 %v1318_v1, %v1304_v11 }
 0xf48   : > { %v1631_v26 = vmul.f32 -1.442695, %v1319_v25 }
 0xf4a   : > { %1773 = vpow2.f32 %v1631_v26 }
 0xf4d   : > { %v1320_v27 = vpop.f32.mrf.mxu2 }
 0xf50   : > { %v1774_v28 = vpop.eup %1773 }
 0xf51   : > { %v1325_v29 = vadd.f32 1.0, %v1774_v28 }
 0xf53   : > { %1775 = vrcp.f32 %v1325_v29  ;;  %v1337_v33 = vand.u32 2147483648, %v1325_v29  ;;  %v1335_v35 = vand.u32 2147483647, %v1325_v29  ;;  %vm1331_vm6 = vweird.f32 %v1325_v29 }
 0xf55   : > { %v1338_v4 = vor.u32 1.1754944e-38, %v1337_v33  ;;  %vm1336_vm9 = vcmp.eq.f32.partialorder %v1335_v35, 8.507059e+37 }
 0xf59   : > { %v1776_v30 = vpop.eup %1775 }
 0xf5a   : > { %v1327_v31 = vmul.f32 %v1776_v30, %v1325_v29  ;;  %vm1332_vm0 = vweird.f32 %v1776_v30 }
 0xf5b   : > { %vm1333_vm8 = vmor %vm1331_vm6, %vm1332_vm0 }
 0xf5c   : > { %v1328_v32 = vsub.f32 1.0, %v1327_v31 }
 0xf5e   : > { %v1329_v34 = vmul.f32 %v1776_v30, %v1328_v32 }
 0xf60   : > { %v1330_v36 = vadd.f32 %v1776_v30, %v1329_v34 }
 0xf62   : > { %v1334_v38 = vsel %vm1333_vm8, %v1776_v30, %v1330_v36 }
 0xf63   : > { %v1339_v39 = vsel %vm1336_vm9, %v1338_v4, %v1334_v38 }
 0xf64   : > { %1341 = vst.msk [vmem:[%s366_s25] sm:$0xff] %vm544_vm7, %v1339_v39 }
 0xf65   : > { %1894 = shalt.err (!%p1891_p10)
}
 0xf66   : > { %1676 = dma.vmem_to_hbm [thread:$0]  (%p2061_p4), %s1356_s23, 128, %s1358_s18, %s1343_s12  }
 0xf67 PF: > { %s1369_s14 = sand.u32 1, %s1925_s27   ;;  %p2348_p13 = scmp.ge.s32.totalorder %s1937_s30, 2 }
 0xf68   : > { %s1370_s13 = scalar_lea.sflag [#allocation4], %s1369_s14 }
 0xf69   : > { %p1690_p11 = pnand %p2348_p13, %p2065_p6 }
 0xf6b   : > { %p1691_p0 = pneg %p1690_p11 }
 0xf6d   : > { %1920 = dma.done.wait (%p1691_p0), %s1370_s13, 128  }
 0xf6e   : > { %1922 = vsyncadd (%p1691_p0), %s1370_s13, 4294967168  ;;  %s2349_s26 = sld [smem:[#allocation12_spill]]  ;;  %p22_p2 = scmp.ge.s32.totalorder %s2035_s24, 4  }
 0xf6f   : > { %s2350_s27 = smov %s1929_s28  ;;  %s2351_s28 = smov %s1933_s29 }
 0xf70   : > { %s2353_s30 = smov %s2035_s24  ;;  %24 = sbr.rel (!%p22_p2) target bundleno = 9 (0x9), region = 112 }
 0xf74   : > { %s2352_s29 = smov %s2349_s26 }
 0xf75   :  { %1376 = vsyncpa [#allocation3], 1 }
 0xf76   :  { %1378 = vsyncpa [#allocation3 + $0x1], 1 }
 0xf77   :  { %1379 = vsyncpa [#allocation6], 1 }
 0xf78   :  { %1380 = vsyncpa [#allocation4], 1 }
 0xf79   :  { %1382 = vsyncpa [#allocation4 + $0x1], 1 }

</bundles_post_ra>
